<compile_context>
chip_gen: v7x
topology: tpu7x:2x2x1
jax: 0.10.0
libtpu: 0.0.40
codegen_flags: <defaults>
</compile_context>

<pallas_src>
import jax
import jax.numpy as jnp
from jax import lax
from jax.experimental import pallas as pl
from jax.experimental.pallas import tpu as pltpu


def _silu_f32(x):
    # exp -> EUP, approx reciprocal -> EUP slot (otherwise idle); avoids the
    # VALU Newton-iteration divide hidden inside jax.nn.sigmoid.
    return x * pl.reciprocal(1.0 + jnp.exp(-x), approx=True)


def _silu_to_bf16(x):
    # f32 MXU accumulator in, a single bf16 activation out (the only copy of
    # h materialized between layers).
    return _silu_f32(x).astype(jnp.bfloat16)


def mlp_score_kernel(inp_ref,
                     wte_ref, bte_ref,
                     w0yx_ref, w0t_ref, b0_ref,
                     wh_ref, bh_ref,
                     wo_ref, bo_ref,
                     out_ref):
    inp = inp_ref[...]                        # (bm, x_dim + 2) f32, packed [y | x | t]
    n_yx = w0yx_ref.shape[0]                  # 1 + x_dim  (y row + x rows)
    tv = inp[:, n_yx:n_yx + 1]                # (bm, 1) time

    # time embedding: K=1 linear as a VPU broadcast multiply (no MXU pass).
    te = _silu_f32(tv * wte_ref[...] + bte_ref[...])           # (bm, H) f32

    # First net layer on concat([y, x, time_embed(t)]):
    #  * y / x contributions (K = 1 + x_dim, tiny) as unrolled VPU broadcast
    #    MACs -> removes a near-empty MXU pass on every TPU generation.
    #  * time-embed contribution as a bf16 MXU matmul with f32 accumulation.
    # TODO(synk): for large x_dim (> ~16) fold w0x into the te matmul instead.
    h = inp[:, 0:1] * w0yx_ref[0:1, :] + b0_ref[...]
    for k in range(1, n_yx):                  # static unroll over x columns
        h = h + inp[:, k:k + 1] * w0yx_ref[k:k + 1, :]
    h = h + jnp.dot(te.astype(jnp.bfloat16), w0t_ref[...],
                    preferred_element_type=jnp.float32)
    h = _silu_to_bf16(h)                      # (bm, H) bf16 carried between layers

    # Remaining (layers - 1) hidden linears + SiLU (fully unrolled).
    def body(i, h):
        z = jnp.dot(h, wh_ref[i], preferred_element_type=jnp.float32) + bh_ref[i]
        return _silu_to_bf16(z)

    h = lax.fori_loop(0, wh_ref.shape[0], body, h, unroll=True)

    # Output head: (bm, H) @ (H, 1) -> (bm, 1); avoids the materialized
    # (bm, H) transpose a lane-dense (1, bm) head would require.
    head = jnp.dot(h, wo_ref[...], preferred_element_type=jnp.float32)
    out_ref[...] = head + bo_ref[...]


def init_params(key, x_dim, hidden=128, layers=5):
    """Deterministic synthetic parameters matching MLPScore's shapes (all f32)."""
    ks = jax.random.split(key, 4 + 2 * layers)
    p = {}
    p["wte"] = jax.random.normal(ks[0], (1, hidden), jnp.float32) * 0.5
    p["bte"] = jax.random.normal(ks[1], (1, hidden), jnp.float32) * 0.1
    # first net layer: Linear(hidden + x_dim + 1, hidden), rows ordered
    # [y-row (1), x-rows (x_dim), time-embed rows (hidden)]
    w0 = jax.random.normal(ks[2], (hidden + x_dim + 1, hidden), jnp.float32) * 0.1
    p["w0y"] = w0[:1]
    p["w0x"] = w0[1:1 + x_dim]
    p["w0t"] = w0[1 + x_dim:]
    p["b0"] = jax.random.normal(ks[3], (1, hidden), jnp.float32) * 0.1
    whs, bhs = [], []
    for i in range(layers - 1):
        whs.append(jax.random.normal(ks[4 + 2 * i], (hidden, hidden), jnp.float32) * 0.1)
        bhs.append(jax.random.normal(ks[5 + 2 * i], (1, hidden), jnp.float32) * 0.1)
    p["wh"] = jnp.stack(whs, axis=0)           # (layers-1, hidden, hidden)
    p["bh"] = jnp.stack(bhs, axis=0)           # (layers-1, 1, hidden)
    p["wo"] = jax.random.normal(ks[-2], (hidden, 1), jnp.float32) * 0.1
    p["bo"] = jax.random.normal(ks[-1], (1, 1), jnp.float32) * 0.1
    return p


def _choose_bm(B, bm_max=1024):
    """Largest batch tile (amortize per-grid-step + weight-push overhead) that
    still leaves >= 2 grid steps when B allows it (v7x has 2 TensorCores)."""
    bm = bm_max
    while bm > 128 and (B + bm - 1) // bm < 2:
        bm //= 2
    return max(bm, 128)


def mlp_score_forward(y, t, x, params, *, bm=None):
    """Pallas implementation of MLPScore.forward(y, t, x) -> (B, 1)."""
    B = y.shape[0]
    x_dim = x.shape[1]
    hidden = params["wte"].shape[1]
    n_hidden = params["wh"].shape[0]
    in_w = x_dim + 2

    if bm is None:
        bm = _choose_bm(B)
    Bp = pl.cdiv(B, bm) * bm

    # Pack [y, x, t] into one batch-tiled array (single input DMA per tile).
    packed = jnp.concatenate(
        [y.astype(jnp.float32),
         x.astype(jnp.float32),
         t.reshape(B, 1).astype(jnp.float32)], axis=1)          # (B, x_dim + 2)
    if Bp != B:
        packed = jnp.pad(packed, ((0, Bp - B), (0, 0)))

    # VPU operands stay f32 (y/x rows, biases); MXU operands are bf16 with f32
    # accumulation inside the kernel.
    w0yx = jnp.concatenate([params["w0y"], params["w0x"]], axis=0)  # (1+x_dim, H)
    w0t = params["w0t"].astype(jnp.bfloat16)                        # (H, H)
    wh = params["wh"].astype(jnp.bfloat16)                          # (L-1, H, H)
    wo = params["wo"].astype(jnp.bfloat16)                          # (H, 1)

    def full_spec(shape):
        nd = len(shape)
        return pl.BlockSpec(shape, lambda i, _nd=nd: (0,) * _nd)

    out = pl.pallas_call(
        mlp_score_kernel,
        out_shape=jax.ShapeDtypeStruct((Bp, 1), jnp.float32),
        grid=(Bp // bm,),
        in_specs=[
            pl.BlockSpec((bm, in_w), lambda i: (i, 0)),        # packed [y|x|t]
            full_spec((1, hidden)),                            # wte   f32
            full_spec((1, hidden)),                            # bte   f32
            full_spec((1 + x_dim, hidden)),                    # w0yx  f32 (VPU)
            full_spec((hidden, hidden)),                       # w0t   bf16
            full_spec((1, hidden)),                            # b0    f32
            full_spec((n_hidden, hidden, hidden)),             # wh    bf16
            full_spec((n_hidden, 1, hidden)),                  # bh    f32
            full_spec((hidden, 1)),                            # wo    bf16
            full_spec((1, 1)),                                 # bo    f32
        ],
        out_specs=pl.BlockSpec((bm, 1), lambda i: (i, 0)),
        compiler_params=pltpu.CompilerParams(
            dimension_semantics=("parallel",),
            vmem_limit_bytes=32 * 1024 * 1024),
    )(packed,
      params["wte"], params["bte"],
      w0yx, w0t, params["b0"],
      wh, params["bh"],
      wo, params["bo"])

    return out[:B]


def mlp_score_reference(y, t, x, params):
    """Pure-JAX f32 reference mirroring the PyTorch forward exactly."""
    def silu(v):
        return v * jax.nn.sigmoid(v)
    te = silu(t[:, None] @ params["wte"] + params["bte"])
    w0 = jnp.concatenate([params["w0y"], params["w0x"], params["w0t"]], axis=0)
    h = jnp.concatenate([y, x, te], axis=1)
    h = silu(h @ w0 + params["b0"])
    for i in range(params["wh"].shape[0]):
        h = silu(h @ params["wh"][i] + params["bh"][i])
    return h @ params["wo"] + params["bo"]


if __name__ == "__main__":
    def run_case(B, x_dim, hidden, layers):
        key = jax.random.PRNGKey(0)
        k_y, k_t, k_x, k_p = jax.random.split(key, 4)
        y = jax.random.normal(k_y, (B, 1), jnp.float32)
        t = jax.random.uniform(k_t, (B,), jnp.float32)
        x = jax.random.normal(k_x, (B, x_dim), jnp.float32)
        params = init_params(k_p, x_dim, hidden=hidden, layers=layers)

        out = jax.block_until_ready(mlp_score_forward(y, t, x, params))
        ref = mlp_score_reference(y, t, x, params)
        assert out.shape == (B, 1)
        # bf16 MXU operands (f32 accumulation) + approx reciprocal vs f32 ref.
        assert jnp.allclose(out, ref, atol=2e-2, rtol=2e-2), \
            f"mismatch vs reference (B={B}, hidden={hidden})"

    # Small harness shapes, plus a production-shaped case (H=128, multi-tile
    # grid, padded batch) as flagged in the review.
    run_case(B=8, x_dim=4, hidden=32, layers=5)
    run_case(B=300, x_dim=4, hidden=128, layers=5)
    print("KERNEL_OK")
</pallas_src>

<mosaic_0001>
module attributes {stable_mosaic.version = 11 : i64} {
  func.func @mlp_score_kernel(%arg0: i32, %arg1: memref<128x6xf32, #tpu.memory_space<vmem>>, %arg2: memref<1x32xf32, #tpu.memory_space<vmem>>, %arg3: memref<1x32xf32, #tpu.memory_space<vmem>>, %arg4: memref<5x32xf32, #tpu.memory_space<vmem>>, %arg5: memref<32x32xbf16, #tpu.memory_space<vmem>>, %arg6: memref<1x32xf32, #tpu.memory_space<vmem>>, %arg7: memref<4x32x32xbf16, #tpu.memory_space<vmem>>, %arg8: memref<4x1x32xf32, #tpu.memory_space<vmem>>, %arg9: memref<32x1xbf16, #tpu.memory_space<vmem>>, %arg10: memref<1x1xf32, #tpu.memory_space<vmem>>, %arg11: memref<128x1xf32, #tpu.memory_space<vmem>>) attributes {dimension_semantics = [#tpu.dimension_semantics<parallel>], iteration_bounds = array<i64: 1>, scalar_prefetch = 0 : i64, scratch_operands = 0 : i64, tpu.core_type = #tpu.core_type<tc>, window_params = [{transform_indices = @transform_0, window_bounds = array<i64: 128, 6>}, {pipeline_mode = #tpu.pipeline_mode<synchronous>, transform_indices = @transform_1, window_bounds = array<i64: 1, 32>}, {pipeline_mode = #tpu.pipeline_mode<synchronous>, transform_indices = @transform_2, window_bounds = array<i64: 1, 32>}, {pipeline_mode = #tpu.pipeline_mode<synchronous>, transform_indices = @transform_3, window_bounds = array<i64: 5, 32>}, {pipeline_mode = #tpu.pipeline_mode<synchronous>, transform_indices = @transform_4, window_bounds = array<i64: 32, 32>}, {pipeline_mode = #tpu.pipeline_mode<synchronous>, transform_indices = @transform_5, window_bounds = array<i64: 1, 32>}, {pipeline_mode = #tpu.pipeline_mode<synchronous>, transform_indices = @transform_6, window_bounds = array<i64: 4, 32, 32>}, {pipeline_mode = #tpu.pipeline_mode<synchronous>, transform_indices = @transform_7, window_bounds = array<i64: 4, 1, 32>}, {pipeline_mode = #tpu.pipeline_mode<synchronous>, transform_indices = @transform_8, window_bounds = array<i64: 32, 1>}, {pipeline_mode = #tpu.pipeline_mode<synchronous>, transform_indices = @transform_9, window_bounds = array<i64: 1, 1>}, {transform_indices = @transform_10, window_bounds = array<i64: 128, 1>}]} {
    %c0 = arith.constant 0 : index
    %c0_0 = arith.constant 0 : index
    %0 = vector.load %arg1[%c0, %c0_0] : memref<128x6xf32, #tpu.memory_space<vmem>>, vector<128x6xf32>
    %1 = vector.extract_strided_slice %0 {offsets = [0, 5], sizes = [128, 1], strides = [1, 1]} : vector<128x6xf32> to vector<128x1xf32>
    %c0_1 = arith.constant 0 : index
    %c0_2 = arith.constant 0 : index
    %2 = vector.load %arg2[%c0_1, %c0_2] : memref<1x32xf32, #tpu.memory_space<vmem>>, vector<1x32xf32>
    %3 = vector.broadcast %1 : vector<128x1xf32> to vector<128x32xf32>
    %4 = vector.broadcast %2 : vector<1x32xf32> to vector<128x32xf32>
    %5 = arith.mulf %3, %4 : vector<128x32xf32>
    %c0_3 = arith.constant 0 : index
    %c0_4 = arith.constant 0 : index
    %6 = vector.load %arg3[%c0_3, %c0_4] : memref<1x32xf32, #tpu.memory_space<vmem>>, vector<1x32xf32>
    %7 = vector.broadcast %6 : vector<1x32xf32> to vector<128x32xf32>
    %8 = arith.addf %5, %7 : vector<128x32xf32>
    %cst = arith.constant 0.000000e+00 : f32
    %9 = vector.broadcast %cst : f32 to vector<128x32xf32>
    %10 = arith.subf %9, %8 : vector<128x32xf32>
    %11 = math.exp %10 : vector<128x32xf32>
    %cst_5 = arith.constant 1.000000e+00 : f32
    %12 = vector.broadcast %cst_5 : f32 to vector<128x32xf32>
    %13 = arith.addf %12, %11 : vector<128x32xf32>
    %14 = tpu.reciprocal %13 {approx = true} : vector<128x32xf32> -> vector<128x32xf32>
    %15 = arith.mulf %8, %14 : vector<128x32xf32>
    %16 = vector.extract_strided_slice %0 {offsets = [0, 0], sizes = [128, 1], strides = [1, 1]} : vector<128x6xf32> to vector<128x1xf32>
    %c0_6 = arith.constant 0 : index
    %c0_7 = arith.constant 0 : index
    %17 = vector.load %arg4[%c0_6, %c0_7] : memref<5x32xf32, #tpu.memory_space<vmem>>, vector<1x32xf32>
    %18 = vector.broadcast %16 : vector<128x1xf32> to vector<128x32xf32>
    %19 = vector.broadcast %17 : vector<1x32xf32> to vector<128x32xf32>
    %20 = arith.mulf %18, %19 : vector<128x32xf32>
    %c0_8 = arith.constant 0 : index
    %c0_9 = arith.constant 0 : index
    %21 = vector.load %arg6[%c0_8, %c0_9] : memref<1x32xf32, #tpu.memory_space<vmem>>, vector<1x32xf32>
    %22 = vector.broadcast %21 : vector<1x32xf32> to vector<128x32xf32>
    %23 = arith.addf %20, %22 : vector<128x32xf32>
    %24 = vector.extract_strided_slice %0 {offsets = [0, 1], sizes = [128, 1], strides = [1, 1]} : vector<128x6xf32> to vector<128x1xf32>
    %c1 = arith.constant 1 : index
    %c0_10 = arith.constant 0 : index
    %25 = vector.load %arg4[%c1, %c0_10] : memref<5x32xf32, #tpu.memory_space<vmem>>, vector<1x32xf32>
    %26 = vector.broadcast %24 : vector<128x1xf32> to vector<128x32xf32>
    %27 = vector.broadcast %25 : vector<1x32xf32> to vector<128x32xf32>
    %28 = arith.mulf %26, %27 : vector<128x32xf32>
    %29 = arith.addf %23, %28 : vector<128x32xf32>
    %30 = vector.extract_strided_slice %0 {offsets = [0, 2], sizes = [128, 1], strides = [1, 1]} : vector<128x6xf32> to vector<128x1xf32>
    %c2 = arith.constant 2 : index
    %c0_11 = arith.constant 0 : index
    %31 = vector.load %arg4[%c2, %c0_11] : memref<5x32xf32, #tpu.memory_space<vmem>>, vector<1x32xf32>
    %32 = vector.broadcast %30 : vector<128x1xf32> to vector<128x32xf32>
    %33 = vector.broadcast %31 : vector<1x32xf32> to vector<128x32xf32>
    %34 = arith.mulf %32, %33 : vector<128x32xf32>
    %35 = arith.addf %29, %34 : vector<128x32xf32>
    %36 = vector.extract_strided_slice %0 {offsets = [0, 3], sizes = [128, 1], strides = [1, 1]} : vector<128x6xf32> to vector<128x1xf32>
    %c3 = arith.constant 3 : index
    %c0_12 = arith.constant 0 : index
    %37 = vector.load %arg4[%c3, %c0_12] : memref<5x32xf32, #tpu.memory_space<vmem>>, vector<1x32xf32>
    %38 = vector.broadcast %36 : vector<128x1xf32> to vector<128x32xf32>
    %39 = vector.broadcast %37 : vector<1x32xf32> to vector<128x32xf32>
    %40 = arith.mulf %38, %39 : vector<128x32xf32>
    %41 = arith.addf %35, %40 : vector<128x32xf32>
    %42 = vector.extract_strided_slice %0 {offsets = [0, 4], sizes = [128, 1], strides = [1, 1]} : vector<128x6xf32> to vector<128x1xf32>
    %c4 = arith.constant 4 : index
    %c0_13 = arith.constant 0 : index
    %43 = vector.load %arg4[%c4, %c0_13] : memref<5x32xf32, #tpu.memory_space<vmem>>, vector<1x32xf32>
    %44 = vector.broadcast %42 : vector<128x1xf32> to vector<128x32xf32>
    %45 = vector.broadcast %43 : vector<1x32xf32> to vector<128x32xf32>
    %46 = arith.mulf %44, %45 : vector<128x32xf32>
    %47 = arith.addf %41, %46 : vector<128x32xf32>
    %48 = arith.truncf %15 : vector<128x32xf32> to vector<128x32xbf16>
    %c0_14 = arith.constant 0 : index
    %c0_15 = arith.constant 0 : index
    %49 = vector.load %arg5[%c0_14, %c0_15] : memref<32x32xbf16, #tpu.memory_space<vmem>>, vector<32x32xbf16>
    %cst_16 = arith.constant dense<0.000000e+00> : vector<128x32xf32>
    %50 = tpu.matmul %48, %49, %cst_16 {dimension_numbers = #tpu.dot_dimension_numbers<[1], [0], [0], [1], [0, 0, 1, 1], [], []>} : vector<128x32xbf16>, vector<32x32xbf16>, vector<128x32xf32> -> vector<128x32xf32>
    %51 = arith.addf %47, %50 : vector<128x32xf32>
    %cst_17 = arith.constant 0.000000e+00 : f32
    %52 = vector.broadcast %cst_17 : f32 to vector<128x32xf32>
    %53 = arith.subf %52, %51 : vector<128x32xf32>
    %54 = math.exp %53 : vector<128x32xf32>
    %cst_18 = arith.constant 1.000000e+00 : f32
    %55 = vector.broadcast %cst_18 : f32 to vector<128x32xf32>
    %56 = arith.addf %55, %54 : vector<128x32xf32>
    %57 = tpu.reciprocal %56 {approx = true} : vector<128x32xf32> -> vector<128x32xf32>
    %58 = arith.mulf %51, %57 : vector<128x32xf32>
    %59 = arith.truncf %58 : vector<128x32xf32> to vector<128x32xbf16>
    %c0_i32 = arith.constant 0 : i32
    %60 = arith.index_cast %c0_i32 : i32 to index
    %c0_19 = arith.constant 0 : index
    %c0_20 = arith.constant 0 : index
    %61 = vector.load %arg7[%60, %c0_19, %c0_20] : memref<4x32x32xbf16, #tpu.memory_space<vmem>>, vector<1x32x32xbf16>
    %62 = vector.shape_cast %61 : vector<1x32x32xbf16> to vector<32x32xbf16>
    %cst_21 = arith.constant dense<0.000000e+00> : vector<128x32xf32>
    %63 = tpu.matmul %59, %62, %cst_21 {dimension_numbers = #tpu.dot_dimension_numbers<[1], [0], [0], [1], [0, 0, 1, 1], [], []>} : vector<128x32xbf16>, vector<32x32xbf16>, vector<128x32xf32> -> vector<128x32xf32>
    %64 = arith.index_cast %c0_i32 : i32 to index
    %c0_22 = arith.constant 0 : index
    %c0_23 = arith.constant 0 : index
    %65 = vector.load %arg8[%64, %c0_22, %c0_23] : memref<4x1x32xf32, #tpu.memory_space<vmem>>, vector<1x1x32xf32>
    %66 = vector.shape_cast %65 : vector<1x1x32xf32> to vector<1x32xf32>
    %67 = vector.broadcast %66 : vector<1x32xf32> to vector<128x32xf32>
    %68 = arith.addf %63, %67 : vector<128x32xf32>
    %cst_24 = arith.constant 0.000000e+00 : f32
    %69 = vector.broadcast %cst_24 : f32 to vector<128x32xf32>
    %70 = arith.subf %69, %68 : vector<128x32xf32>
    %71 = math.exp %70 : vector<128x32xf32>
    %cst_25 = arith.constant 1.000000e+00 : f32
    %72 = vector.broadcast %cst_25 : f32 to vector<128x32xf32>
    %73 = arith.addf %72, %71 : vector<128x32xf32>
    %74 = tpu.reciprocal %73 {approx = true} : vector<128x32xf32> -> vector<128x32xf32>
    %75 = arith.mulf %68, %74 : vector<128x32xf32>
    %76 = arith.truncf %75 : vector<128x32xf32> to vector<128x32xbf16>
    %c1_i32 = arith.constant 1 : i32
    %77 = arith.index_cast %c1_i32 : i32 to index
    %c0_26 = arith.constant 0 : index
    %c0_27 = arith.constant 0 : index
    %78 = vector.load %arg7[%77, %c0_26, %c0_27] : memref<4x32x32xbf16, #tpu.memory_space<vmem>>, vector<1x32x32xbf16>
    %79 = vector.shape_cast %78 : vector<1x32x32xbf16> to vector<32x32xbf16>
    %cst_28 = arith.constant dense<0.000000e+00> : vector<128x32xf32>
    %80 = tpu.matmul %76, %79, %cst_28 {dimension_numbers = #tpu.dot_dimension_numbers<[1], [0], [0], [1], [0, 0, 1, 1], [], []>} : vector<128x32xbf16>, vector<32x32xbf16>, vector<128x32xf32> -> vector<128x32xf32>
    %81 = arith.index_cast %c1_i32 : i32 to index
    %c0_29 = arith.constant 0 : index
    %c0_30 = arith.constant 0 : index
    %82 = vector.load %arg8[%81, %c0_29, %c0_30] : memref<4x1x32xf32, #tpu.memory_space<vmem>>, vector<1x1x32xf32>
    %83 = vector.shape_cast %82 : vector<1x1x32xf32> to vector<1x32xf32>
    %84 = vector.broadcast %83 : vector<1x32xf32> to vector<128x32xf32>
    %85 = arith.addf %80, %84 : vector<128x32xf32>
    %cst_31 = arith.constant 0.000000e+00 : f32
    %86 = vector.broadcast %cst_31 : f32 to vector<128x32xf32>
    %87 = arith.subf %86, %85 : vector<128x32xf32>
    %88 = math.exp %87 : vector<128x32xf32>
    %cst_32 = arith.constant 1.000000e+00 : f32
    %89 = vector.broadcast %cst_32 : f32 to vector<128x32xf32>
    %90 = arith.addf %89, %88 : vector<128x32xf32>
    %91 = tpu.reciprocal %90 {approx = true} : vector<128x32xf32> -> vector<128x32xf32>
    %92 = arith.mulf %85, %91 : vector<128x32xf32>
    %93 = arith.truncf %92 : vector<128x32xf32> to vector<128x32xbf16>
    %c2_i32 = arith.constant 2 : i32
    %94 = arith.index_cast %c2_i32 : i32 to index
    %c0_33 = arith.constant 0 : index
    %c0_34 = arith.constant 0 : index
    %95 = vector.load %arg7[%94, %c0_33, %c0_34] : memref<4x32x32xbf16, #tpu.memory_space<vmem>>, vector<1x32x32xbf16>
    %96 = vector.shape_cast %95 : vector<1x32x32xbf16> to vector<32x32xbf16>
    %cst_35 = arith.constant dense<0.000000e+00> : vector<128x32xf32>
    %97 = tpu.matmul %93, %96, %cst_35 {dimension_numbers = #tpu.dot_dimension_numbers<[1], [0], [0], [1], [0, 0, 1, 1], [], []>} : vector<128x32xbf16>, vector<32x32xbf16>, vector<128x32xf32> -> vector<128x32xf32>
    %98 = arith.index_cast %c2_i32 : i32 to index
    %c0_36 = arith.constant 0 : index
    %c0_37 = arith.constant 0 : index
    %99 = vector.load %arg8[%98, %c0_36, %c0_37] : memref<4x1x32xf32, #tpu.memory_space<vmem>>, vector<1x1x32xf32>
    %100 = vector.shape_cast %99 : vector<1x1x32xf32> to vector<1x32xf32>
    %101 = vector.broadcast %100 : vector<1x32xf32> to vector<128x32xf32>
    %102 = arith.addf %97, %101 : vector<128x32xf32>
    %cst_38 = arith.constant 0.000000e+00 : f32
    %103 = vector.broadcast %cst_38 : f32 to vector<128x32xf32>
    %104 = arith.subf %103, %102 : vector<128x32xf32>
    %105 = math.exp %104 : vector<128x32xf32>
    %cst_39 = arith.constant 1.000000e+00 : f32
    %106 = vector.broadcast %cst_39 : f32 to vector<128x32xf32>
    %107 = arith.addf %106, %105 : vector<128x32xf32>
    %108 = tpu.reciprocal %107 {approx = true} : vector<128x32xf32> -> vector<128x32xf32>
    %109 = arith.mulf %102, %108 : vector<128x32xf32>
    %110 = arith.truncf %109 : vector<128x32xf32> to vector<128x32xbf16>
    %c3_i32 = arith.constant 3 : i32
    %111 = arith.index_cast %c3_i32 : i32 to index
    %c0_40 = arith.constant 0 : index
    %c0_41 = arith.constant 0 : index
    %112 = vector.load %arg7[%111, %c0_40, %c0_41] : memref<4x32x32xbf16, #tpu.memory_space<vmem>>, vector<1x32x32xbf16>
    %113 = vector.shape_cast %112 : vector<1x32x32xbf16> to vector<32x32xbf16>
    %cst_42 = arith.constant dense<0.000000e+00> : vector<128x32xf32>
    %114 = tpu.matmul %110, %113, %cst_42 {dimension_numbers = #tpu.dot_dimension_numbers<[1], [0], [0], [1], [0, 0, 1, 1], [], []>} : vector<128x32xbf16>, vector<32x32xbf16>, vector<128x32xf32> -> vector<128x32xf32>
    %115 = arith.index_cast %c3_i32 : i32 to index
    %c0_43 = arith.constant 0 : index
    %c0_44 = arith.constant 0 : index
    %116 = vector.load %arg8[%115, %c0_43, %c0_44] : memref<4x1x32xf32, #tpu.memory_space<vmem>>, vector<1x1x32xf32>
    %117 = vector.shape_cast %116 : vector<1x1x32xf32> to vector<1x32xf32>
    %118 = vector.broadcast %117 : vector<1x32xf32> to vector<128x32xf32>
    %119 = arith.addf %114, %118 : vector<128x32xf32>
    %cst_45 = arith.constant 0.000000e+00 : f32
    %120 = vector.broadcast %cst_45 : f32 to vector<128x32xf32>
    %121 = arith.subf %120, %119 : vector<128x32xf32>
    %122 = math.exp %121 : vector<128x32xf32>
    %cst_46 = arith.constant 1.000000e+00 : f32
    %123 = vector.broadcast %cst_46 : f32 to vector<128x32xf32>
    %124 = arith.addf %123, %122 : vector<128x32xf32>
    %125 = tpu.reciprocal %124 {approx = true} : vector<128x32xf32> -> vector<128x32xf32>
    %126 = arith.mulf %119, %125 : vector<128x32xf32>
    %127 = arith.truncf %126 : vector<128x32xf32> to vector<128x32xbf16>
    %c4_i32 = arith.constant 4 : i32
    %c0_47 = arith.constant 0 : index
    %c0_48 = arith.constant 0 : index
    %128 = vector.load %arg9[%c0_47, %c0_48] : memref<32x1xbf16, #tpu.memory_space<vmem>>, vector<32x1xbf16>
    %cst_49 = arith.constant dense<0.000000e+00> : vector<128x1xf32>
    %129 = tpu.matmul %127, %128, %cst_49 {dimension_numbers = #tpu.dot_dimension_numbers<[1], [0], [0], [1], [0, 0, 1, 1], [], []>} : vector<128x32xbf16>, vector<32x1xbf16>, vector<128x1xf32> -> vector<128x1xf32>
    %c0_50 = arith.constant 0 : index
    %c0_51 = arith.constant 0 : index
    %130 = vector.load %arg10[%c0_50, %c0_51] : memref<1x1xf32, #tpu.memory_space<vmem>>, vector<1x1xf32>
    %131 = vector.broadcast %130 : vector<1x1xf32> to vector<128x1xf32>
    %132 = arith.addf %129, %131 : vector<128x1xf32>
    %c0_52 = arith.constant 0 : index
    %c0_53 = arith.constant 0 : index
    %133 = vector.load %arg11[%c0_52, %c0_53] : memref<128x1xf32, #tpu.memory_space<vmem>>, vector<128x1xf32>
    tpu.vector_store %arg11[%c0_52, %c0_53], %132 {strides = array<i32>} : memref<128x1xf32, #tpu.memory_space<vmem>>, vector<128x1xf32>,
    return
  }
  func.func @transform_0(%arg0: i32) -> (i32, i32) {
    %c0_i32 = arith.constant 0 : i32
    %c0_i32_0 = arith.constant 0 : i32
    return %arg0, %c0_i32 : i32, i32
  }
  func.func @transform_1(%arg0: i32) -> (i32, i32) {
    %c0_i32 = arith.constant 0 : i32
    %c0_i32_0 = arith.constant 0 : i32
    %c0_i32_1 = arith.constant 0 : i32
    return %c0_i32, %c0_i32_0 : i32, i32
  }
  func.func @transform_2(%arg0: i32) -> (i32, i32) {
    %c0_i32 = arith.constant 0 : i32
    %c0_i32_0 = arith.constant 0 : i32
    %c0_i32_1 = arith.constant 0 : i32
    return %c0_i32, %c0_i32_0 : i32, i32
  }
  func.func @transform_3(%arg0: i32) -> (i32, i32) {
    %c0_i32 = arith.constant 0 : i32
    %c0_i32_0 = arith.constant 0 : i32
    %c0_i32_1 = arith.constant 0 : i32
    return %c0_i32, %c0_i32_0 : i32, i32
  }
  func.func @transform_4(%arg0: i32) -> (i32, i32) {
    %c0_i32 = arith.constant 0 : i32
    %c0_i32_0 = arith.constant 0 : i32
    %c0_i32_1 = arith.constant 0 : i32
    return %c0_i32, %c0_i32_0 : i32, i32
  }
  func.func @transform_5(%arg0: i32) -> (i32, i32) {
    %c0_i32 = arith.constant 0 : i32
    %c0_i32_0 = arith.constant 0 : i32
    %c0_i32_1 = arith.constant 0 : i32
    return %c0_i32, %c0_i32_0 : i32, i32
  }
  func.func @transform_6(%arg0: i32) -> (i32, i32, i32) {
    %c0_i32 = arith.constant 0 : i32
    %c0_i32_0 = arith.constant 0 : i32
    %c0_i32_1 = arith.constant 0 : i32
    %c0_i32_2 = arith.constant 0 : i32
    return %c0_i32, %c0_i32_0, %c0_i32_1 : i32, i32, i32
  }
  func.func @transform_7(%arg0: i32) -> (i32, i32, i32) {
    %c0_i32 = arith.constant 0 : i32
    %c0_i32_0 = arith.constant 0 : i32
    %c0_i32_1 = arith.constant 0 : i32
    %c0_i32_2 = arith.constant 0 : i32
    return %c0_i32, %c0_i32_0, %c0_i32_1 : i32, i32, i32
  }
  func.func @transform_8(%arg0: i32) -> (i32, i32) {
    %c0_i32 = arith.constant 0 : i32
    %c0_i32_0 = arith.constant 0 : i32
    %c0_i32_1 = arith.constant 0 : i32
    return %c0_i32, %c0_i32_0 : i32, i32
  }
  func.func @transform_9(%arg0: i32) -> (i32, i32) {
    %c0_i32 = arith.constant 0 : i32
    %c0_i32_0 = arith.constant 0 : i32
    %c0_i32_1 = arith.constant 0 : i32
    return %c0_i32, %c0_i32_0 : i32, i32
  }
  func.func @transform_10(%arg0: i32) -> (i32, i32) {
    %c0_i32 = arith.constant 0 : i32
    %c0_i32_0 = arith.constant 0 : i32
    return %arg0, %c0_i32 : i32, i32
  }
}

</mosaic_0001>

<bundles_post_ra>
// kernel: tpu_custom_call.1
= control target key start
LH: loop header
LB: loop body
LE: loop exit
PB: predicated region body
PF: predicated region fallthrough
CT: control target
= control target key end

     0   :  { %v2921_v0 = vmov 5   ;;  %v2922_v17 = vmov 0   ;;  %v2923_v20 = vmov 1   ;;  %v2924_v21 = vmov 2   ;;  %s4088_s0 = inlined_call_operand.vmem [shape: f32[128,6], index: 0, kind: input, shape index: {}]   ;;  %s4089_s4 = inlined_call_operand.vmem [shape: bf16[32,32], index: 4, kind: input, shape index: {}]   ;;  %s4090_s1 = inlined_call_operand.vmem [shape: f32[1,32], index: 1, kind: input, shape index: {}]   ;;  %s4091_s2 = inlined_call_operand.vmem [shape: f32[1,32], index: 2, kind: input, shape index: {}]   ;;  %s4092_s3 = inlined_call_operand.vmem [shape: f32[5,32], index: 3, kind: input, shape index: {}]   ;;  %s4093_s5 = inlined_call_operand.vmem [shape: f32[1,32], index: 5, kind: input, shape index: {}]   ;;  %s4094_s6 = inlined_call_operand.vmem [shape: bf16[4,32,32], index: 6, kind: input, shape index: {}]   ;;  %s4095_s7 = inlined_call_operand.vmem [shape: f32[4,1,32], index: 7, kind: input, shape index: {}]   ;;  %s4096_s8 = inlined_call_operand.vmem [shape: bf16[32,1], index: 8, kind: input, shape index: {}]   ;;  %s4097_s9 = inlined_call_operand.<no memory space> [shape: f32[1,1], index: 9, kind: input, shape index: {}]   ;;  %s4098_s10 = inlined_call_operand.vmem [shape: f32[128,1], index: 10, kind: output, shape index: {}]  }
   0x1   :  { %2492 = vset.pattern.permute.xlu1 %v2921_v0  ;;  %2491 = vset.pattern.permute.xlu0 %v2921_v0  ;;  %v2985_v1 = vld [vmem:[%s4088_s0 + $0x10] sm:$0xff]  ;;  %v2990_v2 = vld [vmem:[%s4088_s0] sm:$0xff]  ;;  %v2997_v3 = vld [vmem:[%s4088_s0 + $0x18] sm:$0xff]  ;;  %v2925_v22 = vmov 4   ;;  %v2926_v23 = vmov 3   ;;  %vm812_vm0 = vcmask 261120  }
   0x2   :  { %67 = vperm.xlu1 %2492, %v2985_v1   ;;  %57 = vperm.xlu0 %2491, %v2990_v2   ;;  %v3002_v4 = vld [vmem:[%s4088_s0 + $0x8] sm:$0xff]  ;;  %v3014_v6 = vld [vmem:[%s4088_s0 + $0x20] sm:$0xff]  ;;  %v3021_v7 = vld [vmem:[%s4088_s0 + $0x38] sm:$0xff]  ;;  %vm2196_vm1 = vcmask 7168  }
   0x3   :  { %v3009_v5 = vld [vmem:[%s4088_s0 + $0x28] sm:$0xff]  ;;  %v3026_v8 = vld [vmem:[%s4088_s0 + $0x30] sm:$0xff]  ;;  %v3038_v10 = vld [vmem:[%s4088_s0 + $0x40] sm:$0xff] }
   0x4   :  { %v3033_v9 = vld [vmem:[%s4088_s0 + $0x48] sm:$0xff]  ;;  %v3045_v11 = vld [vmem:[%s4088_s0 + $0x58] sm:$0xff]  ;;  %v3050_v12 = vld [vmem:[%s4088_s0 + $0x50] sm:$0xff] }
   0x5   :  { %v3057_v13 = vld [vmem:[%s4088_s0 + $0x68] sm:$0xff]  ;;  %v3062_v14 = vld [vmem:[%s4088_s0 + $0x60] sm:$0xff]  ;;  %v3069_v15 = vld [vmem:[%s4088_s0 + $0x78] sm:$0xff] }
   0x6   :  { %72 = vperm.xlu1 %2492, %v2997_v3   ;;  %62 = vperm.xlu0 %2491, %v3002_v4   ;;  %v3074_v16 = vld [vmem:[%s4088_s0 + $0x70] sm:$0xff]  ;;  %v2525_v18 = vld [vmem:[%s4089_s4] sm:$0xff]   ;;  %v2526_v19 = vld [vmem:[%s4089_s4 + $0x8] sm:$0xff]  }
   0x7   :  { %2365 = vmatprep.subr.bf16.mxu0 %v2525_v18  ;;  %v3146_v24 = vld [vmem:[%s4090_s1] ss:$0 sm:$0xff] }
   0x8   :  { %2366 = vmatpush3.bf16.msra.mxu0 %v2525_v18  ;;  %v3151_v25 = vld [vmem:[%s4091_s2] ss:$0 sm:$0xff] }
   0x9   :  { %2367 = vmatprep.subr.bf16.mxu0 %v2526_v19 }
   0xa   :  { %82 = vperm.xlu1 %2492, %v3009_v5   ;;  %77 = vperm.xlu0 %2491, %v3014_v6  }
   0xc   :  { %2368 = vmatpush3.bf16.msra.mxu0 %v2526_v19 }
   0xe   :  { %92 = vperm.xlu1 %2492, %v3021_v7   ;;  %87 = vperm.xlu0 %2491, %v3026_v8  }
  0x12   :  { %102 = vperm.xlu1 %2492, %v3033_v9   ;;  %97 = vperm.xlu0 %2491, %v3038_v10  }
  0x16   :  { %112 = vperm.xlu1 %2492, %v3045_v11   ;;  %107 = vperm.xlu0 %2491, %v3050_v12  }
  0x1a   :  { %122 = vperm.xlu1 %2492, %v3057_v13   ;;  %117 = vperm.xlu0 %2491, %v3062_v14  }
  0x1e   :  { %132 = vperm.xlu1 %2492, %v3069_v15   ;;  %127 = vperm.xlu0 %2491, %v3074_v16  }
  0x22   :  { %2494 = vset.pattern.permute.xlu1 %v2922_v17  ;;  %2493 = vset.pattern.permute.xlu0 %v2922_v17 }
  0x23   :  { %282 = vperm.xlu1 %2494, %v3002_v4   ;;  %278 = vperm.xlu0 %2493, %v2990_v2  }
  0x27   :  { %286 = vperm.xlu1 %2494, %v2985_v1   ;;  %290 = vperm.xlu0 %2493, %v2997_v3  }
  0x2b   :  { %2495 = vset.pattern.permute.xlu1 %v2923_v20  ;;  %294 = vperm.xlu0 %2493, %v3014_v6  }
  0x2c   :  { %386 = vperm.xlu1 %2495, %v2990_v2  }
  0x2f   :  { %314 = vperm.xlu0 %2493, %v3033_v9  }
  0x30   :  { %394 = vperm.xlu1 %2495, %v2985_v1  }
  0x33   :  { %318 = vperm.xlu0 %2493, %v3050_v12  }
  0x34   :  { %398 = vperm.xlu1 %2495, %v2997_v3  }
  0x37   :  { %326 = vperm.xlu0 %2493, %v3062_v14  }
  0x38   :  { %2496 = vset.pattern.permute.xlu1 %v2924_v21 }
  0x39   :  { %491 = vperm.xlu1 %2496, %v3002_v4  }
  0x3b   :  { %2512 = vset.pattern.permute.xlu0 %v2925_v22 }
  0x3c   :  { %693 = vperm.xlu0 %2512, %v3002_v4  }
  0x3d   :  { %495 = vperm.xlu1 %2496, %v2985_v1  }
  0x40   :  { %697 = vperm.xlu0 %2512, %v2985_v1  }
  0x41   :  { %2497 = vset.pattern.permute.xlu1 %v2926_v23 }
  0x42   :  { %588 = vperm.xlu1 %2497, %v2990_v2  }
  0x44   :  { %713 = vperm.xlu0 %2512, %v3026_v8  }
  0x46   :  { %596 = vperm.xlu1 %2497, %v2985_v1  }
  0x48   :  { %725 = vperm.xlu0 %2512, %v3033_v9  }
  0x4a   :  { %600 = vperm.xlu1 %2497, %v2997_v3  }
  0x4c   :  { %729 = vperm.xlu0 %2512, %v3050_v12  }
  0x4e   :  { %2498 = vset.pattern.permute.xlu1 %v2922_v17 }
  0x4f   :  { %298 = vperm.xlu1 %2498, %v3009_v5  }
  0x50   :  { %2516 = vset.pattern.permute.xlu0 %v2923_v20 }
  0x51   :  { %390 = vperm.xlu0 %2516, %v3002_v4  }
  0x53   :  { %2499 = vset.pattern.permute.xlu1 %v2925_v22 }
  0x54   :  { %689 = vperm.xlu1 %2499, %v2990_v2  }
  0x55   :  { %402 = vperm.xlu0 %2516, %v3014_v6  }
  0x58   :  { %2500 = vset.pattern.permute.xlu1 %v2922_v17 }
  0x59   :  { %302 = vperm.xlu1 %2500, %v3026_v8   ;;  %414 = vperm.xlu0 %2516, %v3021_v7  }
  0x5d   :  { %306 = vperm.xlu1 %2500, %v3021_v7   ;;  %422 = vperm.xlu0 %2516, %v3033_v9  }
  0x61   :  { %2501 = vset.pattern.permute.xlu1 %v2925_v22  ;;  %434 = vperm.xlu0 %2516, %v3062_v14  }
  0x62   :  { %701 = vperm.xlu1 %2501, %v2997_v3  }
  0x65   :  { %446 = vperm.xlu0 %2516, %v3069_v15  }
  0x66   :  { %2502 = vset.pattern.permute.xlu1 %v2923_v20 }
  0x67   :  { %406 = vperm.xlu1 %2502, %v3009_v5  }
  0x69   :  { %2519 = vset.pattern.permute.xlu0 %v2924_v21 }
  0x6a   :  { %487 = vperm.xlu0 %2519, %v2990_v2  }
  0x6b   :  { %410 = vperm.xlu1 %2502, %v3026_v8  }
  0x6e   :  { %499 = vperm.xlu0 %2519, %v2997_v3  }
  0x6f   :  { %2503 = vset.pattern.permute.xlu1 %v2924_v21 }
  0x70   :  { %503 = vperm.xlu1 %2503, %v3014_v6  }
  0x72   :  { %507 = vperm.xlu0 %2519, %v3009_v5  }
  0x74   :  { %511 = vperm.xlu1 %2503, %v3026_v8  }
  0x76   :  { %519 = vperm.xlu0 %2519, %v3038_v10  }
  0x78   :  { %515 = vperm.xlu1 %2503, %v3021_v7  }
  0x7a   :  { %531 = vperm.xlu0 %2519, %v3045_v11  }
  0x7c   :  { %2504 = vset.pattern.permute.xlu1 %v2926_v23 }
  0x7d   :  { %608 = vperm.xlu1 %2504, %v3009_v5  }
  0x7e   :  { %539 = vperm.xlu0 %2519, %v3057_v13  }
  0x81   :  { %v68_v26 = vpop.permute.xlu1 %67  ;;  %612 = vperm.xlu1 %2504, %v3026_v8   ;;  %v58_v27 = vpop.permute.xlu0 %57 }
  0x82   :  { %v143_v28 = vmul.f32 %v3146_v24, %v68_v26  ;;  %v141_v29 = vmul.f32 %v3146_v24, %v58_v27  ;;  %2521 = vset.pattern.permute.xlu0 %v2926_v23 }
  0x83   :  { %592 = vperm.xlu0 %2521, %v3002_v4  }
  0x84   :  { %v3159_v30 = vadd.f32 %v3151_v25, %v143_v28  ;;  %v3162_v31 = vadd.f32 %v3151_v25, %v141_v29 }
  0x85   :  { %v73_v32 = vpop.permute.xlu1 %72  ;;  %2505 = vset.pattern.permute.xlu1 %v2922_v17  ;;  %v63_v33 = vpop.permute.xlu0 %62 }
  0x86   :  { %v182_v34 = vsub.f32 0.0, %v3159_v30  ;;  %v180_v35 = vsub.f32 0.0, %v3162_v31  ;;  %v144_v36 = vmul.f32 %v3146_v24, %v73_v32  ;;  %v142_v37 = vmul.f32 %v3146_v24, %v63_v33  ;;  %310 = vperm.xlu1 %2505, %v3038_v10  }
  0x87   :  { %604 = vperm.xlu0 %2521, %v3014_v6  }
  0x88   :  { %v200_v38 = vmul.f32 1.442695, %v182_v34  ;;  %v196_v39 = vmul.f32 1.442695, %v180_v35  ;;  %v3172_v40 = vadd.f32 %v3151_v25, %v144_v36  ;;  %v3175_v41 = vadd.f32 %v3151_v25, %v142_v37 }
  0x89   :  { %v83_v42 = vpop.permute.xlu1 %82  ;;  %v78_v43 = vpop.permute.xlu0 %77 }
  0x8a   :  { %2537 = vpow2.f32 %v200_v38  ;;  %v183_v44 = vsub.f32 0.0, %v3172_v40  ;;  %v181_v45 = vsub.f32 0.0, %v3175_v41  ;;  %v146_v46 = vmul.f32 %v3146_v24, %v83_v42  ;;  %2506 = vset.pattern.permute.xlu1 %v2925_v22 }
  0x8b   :  { %2539 = vpow2.f32 %v196_v39  ;;  %v145_v47 = vmul.f32 %v3146_v24, %v78_v43  ;;  %705 = vperm.xlu1 %2506, %v3014_v6   ;;  %616 = vperm.xlu0 %2521, %v3021_v7  }
  0x8c   :  { %v202_v48 = vmul.f32 1.442695, %v183_v44  ;;  %v198_v49 = vmul.f32 1.442695, %v181_v45  ;;  %v3185_v50 = vadd.f32 %v3151_v25, %v146_v46 }
  0x8d   :  { %v3188_v51 = vadd.f32 %v3151_v25, %v145_v47  ;;  %v93_v52 = vpop.permute.xlu1 %92  ;;  %v88_v53 = vpop.permute.xlu0 %87 }
  0x8e   :  { %2541 = vpow2.f32 %v202_v48  ;;  %v185_v54 = vsub.f32 0.0, %v3185_v50  ;;  %v148_v55 = vmul.f32 %v3146_v24, %v93_v52  ;;  %v147_v56 = vmul.f32 %v3146_v24, %v88_v53 }
  0x8f   :  { %2543 = vpow2.f32 %v198_v49  ;;  %v184_v57 = vsub.f32 0.0, %v3188_v51  ;;  %709 = vperm.xlu1 %2506, %v3009_v5   ;;  %624 = vperm.xlu0 %2521, %v3033_v9  }
  0x90   :  { %v206_v58 = vmul.f32 1.442695, %v185_v54  ;;  %v3197_v59 = vadd.f32 %v3151_v25, %v148_v55  ;;  %v3200_v60 = vadd.f32 %v3151_v25, %v147_v56 }
  0x91   :  { %v204_v61 = vmul.f32 1.442695, %v184_v57  ;;  %v103_v62 = vpop.permute.xlu1 %102  ;;  %v98_v63 = vpop.permute.xlu0 %97 }
  0x92   :  { %2545 = vpow2.f32 %v206_v58  ;;  %v187_v0 = vsub.f32 0.0, %v3197_v59  ;;  %v186_v1 = vsub.f32 0.0, %v3200_v60  ;;  %v150_v2 = vmul.f32 %v3146_v24, %v103_v62 }
  0x93   :  { %2547 = vpow2.f32 %v204_v61  ;;  %v149_v3 = vmul.f32 %v3146_v24, %v98_v63  ;;  %2507 = vset.pattern.permute.xlu1 %v2922_v17  ;;  %636 = vperm.xlu0 %2521, %v3062_v14  }
  0x94   :  { %v2538_v4 = vpop.eup %2537  ;;  %v210_v5 = vmul.f32 1.442695, %v187_v0  ;;  %v3209_v6 = vadd.f32 %v3151_v25, %v150_v2  ;;  %322 = vperm.xlu1 %2507, %v3045_v11   ;;  %v208_v19 = vmul.f32 1.442695, %v186_v1 }
  0x95   :  { %v2540_v8 = vpop.eup %2539  ;;  %v230_v18 = vadd.f32 1.0, %v2538_v4  ;;  %v3213_v26 = vadd.f32 %v3151_v25, %v149_v3  ;;  %v113_v27 = vpop.permute.xlu1 %112 }
  0x96   :  { %v108_v28 = vpop.permute.xlu0 %107  ;;  %v228_v29 = vadd.f32 1.0, %v2540_v8  ;;  %2549 = vpow2.f32 %v210_v5  ;;  %v189_v32 = vsub.f32 0.0, %v3209_v6  ;;  %v152_v33 = vmul.f32 %v3146_v24, %v113_v27 }
  0x97   :  { %2551 = vrcp.f32 %v230_v18  ;;  %v188_v34 = vsub.f32 0.0, %v3213_v26  ;;  %v151_v35 = vmul.f32 %v3146_v24, %v108_v28  ;;  %648 = vperm.xlu0 %2521, %v3069_v15  }
  0x98   :  { %v2542_v36 = vpop.eup %2541  ;;  %2553 = vrcp.f32 %v228_v29  ;;  %v214_v37 = vmul.f32 1.442695, %v189_v32  ;;  %v3221_v38 = vadd.f32 %v3151_v25, %v152_v33  ;;  %2508 = vset.pattern.permute.xlu1 %v2925_v22 }
  0x99   :  { %v2544_v39 = vpop.eup %2543  ;;  %v231_v42 = vadd.f32 1.0, %v2542_v36  ;;  %2555 = vpow2.f32 %v208_v19  ;;  %v212_v43 = vmul.f32 1.442695, %v188_v34  ;;  %v3225_v44 = vadd.f32 %v3151_v25, %v151_v35  ;;  %v123_v45 = vpop.permute.xlu1 %122  ;;  %717 = vperm.xlu1 %2508, %v3021_v7  }
  0x9a   :  { %v118_v46 = vpop.permute.xlu0 %117  ;;  %v229_v47 = vadd.f32 1.0, %v2544_v39  ;;  %2557 = vpow2.f32 %v214_v37  ;;  %v191_v48 = vsub.f32 0.0, %v3221_v38  ;;  %v154_v49 = vmul.f32 %v3146_v24, %v123_v45 }
  0x9b   :  { %2559 = vrcp.f32 %v231_v42  ;;  %v190_v52 = vsub.f32 0.0, %v3225_v44  ;;  %v153_v53 = vmul.f32 %v3146_v24, %v118_v46  ;;  %2524 = vset.pattern.permute.xlu0 %v2925_v22 }
  0x9c   :  { %v2546_v54 = vpop.eup %2545  ;;  %2561 = vrcp.f32 %v229_v47  ;;  %v218_v55 = vmul.f32 1.442695, %v191_v48  ;;  %v3234_v56 = vadd.f32 %v3151_v25, %v154_v49  ;;  %741 = vperm.xlu0 %2524, %v3057_v13  }
  0x9d   :  { %v2548_v7 = vpop.eup %2547  ;;  %v233_v57 = vadd.f32 1.0, %v2546_v54  ;;  %2563 = vpow2.f32 %v212_v43  ;;  %v216_v58 = vmul.f32 1.442695, %v190_v52  ;;  %v3238_v61 = vadd.f32 %v3151_v25, %v153_v53  ;;  %v133_v62 = vpop.permute.xlu1 %132  ;;  %2509 = vset.pattern.permute.xlu1 %v2923_v20 }
  0x9e   :  { %v128_v63 = vpop.permute.xlu0 %127  ;;  %v232_v0 = vadd.f32 1.0, %v2548_v7  ;;  %2565 = vpow2.f32 %v218_v55  ;;  %v193_v1 = vsub.f32 0.0, %v3234_v56  ;;  %v156_v2 = vmul.f32 %v3146_v24, %v133_v62  ;;  %418 = vperm.xlu1 %2509, %v3038_v10   ;;  %v3270_v62 = vld [vmem:[%s4093_s5] ss:$0 sm:$0xff] }
  0x9f   :  { %2567 = vrcp.f32 %v233_v57  ;;  %v192_v3 = vsub.f32 0.0, %v3238_v61  ;;  %v155_v4 = vmul.f32 %v3146_v24, %v128_v63 }
  0xa0   :  { %v2550_v5 = vpop.eup %2549  ;;  %2569 = vrcp.f32 %v232_v0  ;;  %v222_v8 = vmul.f32 1.442695, %v193_v1  ;;  %v3247_v18 = vadd.f32 %v3151_v25, %v156_v2 }
  0xa1   :  { %v2552_v19 = vpop.eup %2551  ;;  %v235_v27 = vadd.f32 1.0, %v2550_v5  ;;  %2571 = vpow2.f32 %v216_v58  ;;  %v220_v28 = vmul.f32 1.442695, %v192_v3  ;;  %v3250_v29 = vadd.f32 %v3151_v25, %v155_v4  ;;  %v3260_v25 = vld [vmem:[%s4092_s3] ss:$0 sm:$0xff] }
  0xa2   :  { %v2554_v32 = vpop.eup %2553  ;;  %2573 = vpow2.f32 %v222_v8  ;;  %v195_v33 = vsub.f32 0.0, %v3247_v18  ;;  %426 = vperm.xlu1 %2509, %v3050_v12   ;;  %v279_v24 = vpop.permute.xlu0 %278  ;;  %v262_v55 = vmul.f32 %v2552_v19, %v3159_v30  ;;  %v3284_v19 = vld [vmem:[%s4092_s3 + $0x1] ss:$0 sm:$0xff] }
  0xa3   :  { %v3254_v34 = vpop.permute.xlu1 %282  ;;  %v2556_v35 = vpop.eup %2555  ;;  %2575 = vrcp.f32 %v235_v27  ;;  %v194_v36 = vsub.f32 0.0, %v3250_v29  ;;  %v345_v47 = vmul.f32 %v3260_v25, %v279_v24 }
  0xa4   :  { %v2558_v37 = vpop.eup %2557  ;;  %v234_v39 = vadd.f32 1.0, %v2556_v35  ;;  %2577 = vpow2.f32 %v220_v28  ;;  %v226_v42 = vmul.f32 1.442695, %v195_v33 }
  0xa5   :  { %v2560_v43 = vpop.eup %2559  ;;  %v237_v45 = vadd.f32 1.0, %v2558_v37  ;;  %v224_v46 = vmul.f32 1.442695, %v194_v36  ;;  %v368_v1 = vadd.f32 %v3270_v62, %v345_v47 }
  0xa6   :  { %v2562_v48 = vpop.eup %2561  ;;  %v263_v49 = vmul.f32 %v2560_v43, %v3172_v40  ;;  %2579 = vrcp.f32 %v234_v39  ;;  %430 = vperm.xlu1 %2509, %v3045_v11   ;;  %v291_v52 = vpop.permute.xlu0 %290  ;;  %v260_v40 = vmul.f32 %v2554_v32, %v3162_v31 }
  0xa7   :  { %v287_v53 = vpop.permute.xlu1 %286  ;;  %v2564_v54 = vpop.eup %2563  ;;  %2581 = vrcp.f32 %v237_v45  ;;  %v261_v7 = vmul.f32 %v2562_v48, %v3175_v41 }
  0xa8   :  { %v2566_v57 = vpop.eup %2565  ;;  %v236_v58 = vadd.f32 1.0, %v2564_v54  ;;  %2583 = vpow2.f32 %v226_v42  ;;  %v789_v30 = vpack.c.bf16 %v263_v49, %v262_v55  ;;  %v347_v3 = vmul.f32 %v3260_v25, %v287_v53 }
  0xa9   :  { %v2568_v63 = vpop.eup %2567  ;;  %v239_v0 = vadd.f32 1.0, %v2566_v57  ;;  %2585 = vpow2.f32 %v224_v46  ;;  %v788_v4 = vpack.c.bf16 %v261_v7, %v260_v40 }
  0xaa   :  { %v2570_v2 = vpop.eup %2569  ;;  %v265_v41 = vmul.f32 %v2568_v63, %v3185_v50  ;;  %2587 = vrcp.f32 %v236_v58  ;;  %2510 = vset.pattern.permute.xlu1 %v2924_v21  ;;  %v3277_v5 = vpop.permute.xlu0 %294  ;;  %v370_v36 = vadd.f32 %v3270_v62, %v347_v3 }
  0xab   :  { %v2572_v8 = vpop.eup %2571  ;;  %v264_v31 = vmul.f32 %v2570_v2, %v3188_v51  ;;  %2589 = vrcp.f32 %v239_v0  ;;  %523 = vperm.xlu1 %2510, %v3033_v9   ;;  %v387_v50 = vpop.permute.xlu1 %386  ;;  %2369 = vmatprep.mubr.msk.bf16.mxu0 %vm812_vm0, %v788_v4  ;;  %v348_v9 = vmul.f32 %v3260_v25, %v291_v52 }
  0xac   :  { %v2574_v27 = vpop.eup %2573  ;;  %v238_v28 = vadd.f32 1.0, %v2572_v8  ;;  %v453_v32 = vmul.f32 %v3284_v19, %v387_v50  ;;  %2370 = vmatmul.mubr.msk.bf16.vlgmr.msra.gmra.mrb[0].mxu0 %vm812_vm0, %v789_v30 }
  0xad   :  { %v2576_v33 = vpop.eup %2575  ;;  %v790_v24 = vpack.c.bf16 %v265_v41, %v264_v31  ;;  %v241_v35 = vadd.f32 1.0, %v2574_v27  ;;  %v371_v53 = vadd.f32 %v3270_v62, %v348_v9  ;;  %v3323_v27 = vld [vmem:[%s4092_s3 + $0x2] ss:$0 sm:$0xff] }
  0xae   :  { %v2578_v51 = vpop.eup %2577  ;;  %2591 = vrcp.f32 %v238_v28  ;;  %v3291_v37 = vadd.f32 %v453_v32, %v368_v1  ;;  %v3293_v39 = vpop.permute.xlu0 %314  ;;  %v267_v42 = vmul.f32 %v2576_v33, %v3197_v59 }
  0xaf   :  { %2593 = vrcp.f32 %v241_v35  ;;  %v240_v43 = vadd.f32 1.0, %v2578_v51  ;;  %2373 = vmatprep.mubr.msk.bf16.mxu0 %vm812_vm0, %v790_v24  ;;  %527 = vperm.xlu1 %2510, %v3050_v12   ;;  %v395_v45 = vpop.permute.xlu1 %394 }
  0xb0   :  { %v2580_v46 = vpop.eup %2579  ;;  %v455_v47 = vmul.f32 %v3284_v19, %v395_v45  ;;  %v3339_v45 = vld [vmem:[%s4092_s3 + $0x4] ss:$0 sm:$0xff] }
  0xb1   :  { %v2582_v48 = vpop.eup %2581  ;;  %v266_v49 = vmul.f32 %v2580_v46, %v3200_v60  ;;  %2595 = vrcp.f32 %v240_v43  ;;  %v3344_v46 = vld [vmem:[%s4092_s3 + $0x3] ss:$0 sm:$0xff] }
  0xb2   :  { %v2584_v52 = vpop.eup %2583  ;;  %v471_v54 = vadd.f32 %v455_v47, %v370_v36  ;;  %v3301_v55 = vpop.permute.xlu0 %318  ;;  %v269_v57 = vmul.f32 %v2582_v48, %v3209_v6 }
  0xb3   :  { %v2586_v59 = vpop.eup %2585  ;;  %v791_v7 = vpack.c.bf16 %v267_v42, %v266_v49  ;;  %v243_v58 = vadd.f32 1.0, %v2584_v52  ;;  %2511 = vset.pattern.permute.xlu1 %v2926_v23  ;;  %v399_v40 = vpop.permute.xlu1 %398 }
  0xb4   :  { %v2588_v63 = vpop.eup %2587  ;;  %v242_v0 = vadd.f32 1.0, %v2586_v59  ;;  %620 = vperm.xlu1 %2511, %v3038_v10   ;;  %v456_v60 = vmul.f32 %v3284_v19, %v399_v40 }
  0xb5   :  { %v2590_v1 = vpop.eup %2589  ;;  %v268_v30 = vmul.f32 %v2588_v63, %v3213_v26  ;;  %2597 = vrcp.f32 %v243_v58  ;;  %2374 = vmatmul.mubr.msk.bf16.gmra.mrb[4].mxu0 %vm812_vm0, %v791_v7 }
  0xb6   :  { %2599 = vrcp.f32 %v242_v0  ;;  %v3309_v2 = vadd.f32 %v456_v60, %v371_v53  ;;  %v3311_v6 = vpop.permute.xlu0 %326  ;;  %v271_v3 = vmul.f32 %v2590_v1, %v3221_v38 }
  0xb7   :  { %v792_v41 = vpack.c.bf16 %v269_v57, %v268_v30 }
  0xb8   :  { %v2592_v4 = vpop.eup %2591  ;;  %628 = vperm.xlu1 %2511, %v3050_v12   ;;  %v3315_v8 = vpop.permute.xlu1 %491 }
  0xb9   :  { %v2594_v31 = vpop.eup %2593  ;;  %v270_v50 = vmul.f32 %v2592_v4, %v3225_v44  ;;  %2377 = vmatprep.mubr.msk.bf16.mxu0 %vm812_vm0, %v792_v41 }
  0xba   :  { %v273_v26 = vmul.f32 %v2594_v31, %v3234_v56 }
  0xbb   :  { %v2596_v28 = vpop.eup %2595  ;;  %v793_v32 = vpack.c.bf16 %v271_v3, %v270_v50  ;;  %v3325_v38 = vpop.permute.xlu0 %693  ;;  %v349_v3 = vmul.f32 %v3260_v25, %v3277_v5 }
  0xbc   :  { %v272_v12 = vmul.f32 %v2596_v28, %v3238_v61  ;;  %632 = vperm.xlu1 %2511, %v3045_v11   ;;  %v496_v33 = vpop.permute.xlu1 %495 }
  0xbd   :  { %2378 = vmatmul.mubr.msk.bf16.gmra.mrb[8].mxu0 %vm812_vm0, %v793_v32  ;;  %v556_v44 = vmul.f32 %v3323_v27, %v496_v33  ;;  %v372_v28 = vadd.f32 %v3270_v62, %v349_v3 }
  0xbe   :  { %v794_v24 = vpack.c.bf16 %v273_v26, %v272_v12 }
  0xbf   :  { %v2598_v56 = vpop.eup %2597  ;;  %v572_v35 = vadd.f32 %v556_v44, %v471_v54  ;;  %v698_v51 = vpop.permute.xlu0 %697 }
  0xc0   :  { %v2600_v9 = vpop.eup %2599  ;;  %v275_v36 = vmul.f32 %v2598_v56, %v3247_v18  ;;  %2381 = vmatprep.mubr.msk.bf16.mxu0 %vm812_vm0, %v794_v24  ;;  %2513 = vset.pattern.permute.xlu1 %v2922_v17  ;;  %v758_v47 = vmul.f32 %v3339_v45, %v698_v51 }
  0xc1   :  { %v274_v61 = vmul.f32 %v2600_v9, %v3250_v29  ;;  %330 = vperm.xlu1 %2513, %v3057_v13   ;;  %v589_v42 = vpop.permute.xlu1 %588 }
  0xc2   :  { %v655_v44 = vmul.f32 %v3344_v46, %v589_v42 }
  0xc3   :  { %v795_v43 = vpack.c.bf16 %v275_v36, %v274_v61  ;;  %v3346_v18 = vpop.permute.xlu0 %713 }
  0xc5   :  { %2382 = vmatmul.mubr.msk.bf16.gmra.mrb[12].mxu0 %vm812_vm0, %v795_v43  ;;  %2514 = vset.pattern.permute.xlu1 %v2925_v22  ;;  %v597_v29 = vpop.permute.xlu1 %596 }
  0xc6   :  { %v657_v48 = vmul.f32 %v3344_v46, %v597_v29  ;;  %721 = vperm.xlu1 %2514, %v3038_v10  }
  0xc7   :  { %v3353_v49 = vpop.permute.xlu0 %725 }
  0xc8   :  { %v673_v52 = vadd.f32 %v657_v48, %v572_v35 }
  0xc9   :  { %v601_v53 = vpop.permute.xlu1 %600 }
  0xca   :  { %2515 = vset.pattern.permute.xlu1 %v2922_v17  ;;  %v3356_v54 = vadd.f32 %v758_v47, %v673_v52  ;;  %v658_v43 = vmul.f32 %v3344_v46, %v601_v53 }
  0xcb   :  { %334 = vperm.xlu1 %2515, %v3074_v16   ;;  %v3359_v59 = vpop.permute.xlu0 %729 }
  0xce   :  { %v299_v7 = vpop.permute.xlu1 %298 }
  0xcf   :  { %338 = vperm.xlu1 %2515, %v3069_v15   ;;  %v350_v1 = vmul.f32 %v3260_v25, %v299_v7 }
  0xd0   :  { %v3362_v57 = vpop.permute.xlu0 %390 }
  0xd3   :  { %2517 = vset.pattern.permute.xlu1 %v2925_v22  ;;  %v690_v10 = vpop.permute.xlu1 %689 }
  0xd4   :  { %733 = vperm.xlu1 %2517, %v3045_v11   ;;  %v403_v58 = vpop.permute.xlu0 %402  ;;  %v756_v9 = vmul.f32 %v3339_v45, %v690_v10 }
  0xd5   :  { %v457_v32 = vmul.f32 %v3284_v19, %v403_v58 }
  0xd7   :  { %v473_v51 = vadd.f32 %v457_v32, %v372_v28 }
  0xd8   :  { %2518 = vset.pattern.permute.xlu1 %v2923_v20  ;;  %v415_v17 = vpop.permute.xlu0 %414  ;;  %v303_v40 = vpop.permute.xlu1 %302  ;;  %v373_v20 = vadd.f32 %v3270_v62, %v350_v1 }
  0xd9   :  { %438 = vperm.xlu1 %2518, %v3057_v13   ;;  %v351_v41 = vmul.f32 %v3260_v25, %v303_v40  ;;  %v460_v53 = vmul.f32 %v3284_v19, %v415_v17  ;;  %v346_v17 = vmul.f32 %v3260_v25, %v3254_v34 }
  0xdb   :  { %v374_v50 = vadd.f32 %v3270_v62, %v351_v41 }
  0xdc   :  { %v3368_v63 = vpop.permute.xlu0 %422  ;;  %v307_v0 = vpop.permute.xlu1 %306 }
  0xdd   :  { %442 = vperm.xlu1 %2518, %v3074_v16   ;;  %v352_v29 = vmul.f32 %v3260_v25, %v307_v0 }
  0xdf   :  { %v375_v40 = vadd.f32 %v3270_v62, %v352_v29 }
  0xe0   :  { %v3371_v60 = vpop.permute.xlu0 %434 }
  0xe1   :  { %2520 = vset.pattern.permute.xlu1 %v2924_v21  ;;  %v702_v30 = vpop.permute.xlu1 %701 }
  0xe2   :  { %535 = vperm.xlu1 %2520, %v3062_v14   ;;  %v759_v42 = vmul.f32 %v3339_v45, %v702_v30 }
  0xe4   :  { %v3376_v11 = vpop.permute.xlu0 %446 }
  0xe6   :  { %543 = vperm.xlu1 %2520, %v3074_v16   ;;  %v407_v4 = vpop.permute.xlu1 %406 }
  0xe7   :  { %v458_v31 = vmul.f32 %v3284_v19, %v407_v4 }
  0xe9   :  { %v474_v21 = vadd.f32 %v458_v31, %v373_v20  ;;  %v488_v26 = vpop.permute.xlu0 %487  ;;  %v476_v20 = vadd.f32 %v460_v53, %v375_v40 }
  0xea   :  { %v554_v12 = vmul.f32 %v3323_v27, %v488_v26  ;;  %547 = vperm.xlu1 %2520, %v3069_v15   ;;  %v411_v33 = vpop.permute.xlu1 %410  ;;  %v369_v26 = vadd.f32 %v3270_v62, %v346_v17  ;;  %v2527_v17 = vld [vmem:[%s4094_s6] sm:$0xff]  }
  0xeb   :  { %v459_v5 = vmul.f32 %v3284_v19, %v411_v33  ;;  %2385 = vmatprep.subr.bf16.mxu1 %v2527_v17 }
  0xec   :  { %v570_v24 = vadd.f32 %v554_v12, %v3291_v37  ;;  %2386 = vmatpush3.bf16.msra.mxu1 %v2527_v17 }
  0xed   :  { %v475_v56 = vadd.f32 %v459_v5, %v374_v50  ;;  %v500_v35 = vpop.permute.xlu0 %499  ;;  %v454_v50 = vmul.f32 %v3284_v19, %v3362_v57  ;;  %v555_v5 = vmul.f32 %v3323_v27, %v3315_v8  ;;  %v762_v57 = vmul.f32 %v3339_v45, %v3346_v18 }
  0xee   :  { %v557_v36 = vmul.f32 %v3323_v27, %v500_v35  ;;  %2522 = vset.pattern.permute.xlu1 %v2926_v23  ;;  %v671_v61 = vadd.f32 %v655_v44, %v570_v24 }
  0xef   :  { %640 = vperm.xlu1 %2522, %v3057_v13   ;;  %v504_v47 = vpop.permute.xlu1 %503  ;;  %v470_v12 = vadd.f32 %v454_v50, %v369_v26 }
  0xf0   :  { %v573_v37 = vadd.f32 %v557_v36, %v3309_v2  ;;  %v558_v48 = vmul.f32 %v3323_v27, %v504_v47  ;;  %v3401_v52 = vadd.f32 %v756_v9, %v671_v61 }
  0xf1   :  { %v508_v7 = vpop.permute.xlu0 %507 }
  0xf2   :  { %v574_v10 = vadd.f32 %v558_v48, %v473_v51  ;;  %v674_v58 = vadd.f32 %v658_v43, %v573_v37  ;;  %v559_v3 = vmul.f32 %v3323_v27, %v508_v7 }
  0xf3   :  { %644 = vperm.xlu1 %2522, %v3074_v16   ;;  %v512_v23 = vpop.permute.xlu1 %511 }
  0xf4   :  { %v560_v13 = vmul.f32 %v3323_v27, %v512_v23  ;;  %v3407_v0 = vadd.f32 %v759_v42, %v674_v58  ;;  %v575_v28 = vadd.f32 %v559_v3, %v474_v21  ;;  %v757_v21 = vmul.f32 %v3339_v45, %v3325_v38 }
  0xf5   :  { %v3409_v1 = vpop.permute.xlu0 %519 }
  0xf6   :  { %v576_v2 = vadd.f32 %v560_v13, %v475_v56  ;;  %v571_v56 = vadd.f32 %v555_v5, %v470_v12 }
  0xf7   :  { %2523 = vset.pattern.permute.xlu1 %v2925_v22  ;;  %v516_v30 = vpop.permute.xlu1 %515 }
  0xf8   :  { %v561_v41 = vmul.f32 %v3323_v27, %v516_v30  ;;  %737 = vperm.xlu1 %2523, %v3062_v14  }
  0xf9   :  { %v3417_v4 = vpop.permute.xlu0 %531 }
  0xfa   :  { %v577_v31 = vadd.f32 %v561_v41, %v476_v20  ;;  %v355_v20 = vmul.f32 %v3260_v25, %v3301_v55  ;;  %v2528_v55 = vld [vmem:[%s4094_s6 + $0x8] sm:$0xff]  }
  0xfb   :  { %2387 = vmatprep.subr.bf16.mxu1 %v2528_v55 }
  0xfc   :  { %745 = vperm.xlu1 %2523, %v3074_v16   ;;  %v609_v22 = vpop.permute.xlu1 %608  ;;  %2388 = vmatpush3.bf16.msra.mxu1 %v2528_v55  ;;  %v465_v55 = vmul.f32 %v3284_v19, %v3371_v60 }
  0xfd   :  { %v660_v32 = vmul.f32 %v3344_v46, %v609_v22  ;;  %v3424_v14 = vpop.permute.xlu0 %539  ;;  %v378_v22 = vadd.f32 %v3270_v62, %v355_v20 }
  0xff   :  { %v676_v34 = vadd.f32 %v660_v32, %v575_v28  ;;  %v354_v28 = vmul.f32 %v3260_v25, %v3293_v39 }
 0x100   :  { %749 = vperm.xlu1 %2523, %v3069_v15   ;;  %v613_v33 = vpop.permute.xlu1 %612 }
 0x101   :  { %v661_v16 = vmul.f32 %v3344_v46, %v613_v33  ;;  %v377_v5 = vadd.f32 %v3270_v62, %v354_v28  ;;  %v562_v28 = vmul.f32 %v3323_v27, %v3409_v1 }
 0x102   :  { %v593_v44 = vpop.permute.xlu0 %592 }
 0x103   :  { %v677_v24 = vadd.f32 %v661_v16, %v576_v2  ;;  %v656_v35 = vmul.f32 %v3344_v46, %v593_v44 }
 0x105   :  { %v672_v51 = vadd.f32 %v656_v35, %v571_v56  ;;  %v311_v9 = vpop.permute.xlu1 %310  ;;  %v3435_v15 = vadd.f32 %v762_v57, %v677_v24  ;;  %v462_v57 = vmul.f32 %v3284_v19, %v3368_v63  ;;  %v765_v35 = vmul.f32 %v3339_v45, %v3353_v49 }
 0x106   :  { %v605_v36 = vpop.permute.xlu0 %604  ;;  %v353_v23 = vmul.f32 %v3260_v25, %v311_v9 }
 0x107   :  { %v659_v8 = vmul.f32 %v3344_v46, %v605_v36  ;;  %v3438_v61 = vadd.f32 %v757_v21, %v672_v51  ;;  %v478_v24 = vadd.f32 %v462_v57, %v377_v5 }
 0x108   :  { %v376_v2 = vadd.f32 %v3270_v62, %v353_v23 }
 0x109   :  { %v675_v18 = vadd.f32 %v659_v8, %v574_v10 }
 0x10a   :  { %v706_v43 = vpop.permute.xlu1 %705  ;;  %v617_v48 = vpop.permute.xlu0 %616 }
 0x10b   :  { %v760_v29 = vmul.f32 %v3339_v45, %v706_v43  ;;  %v662_v58 = vmul.f32 %v3344_v46, %v617_v48 }
 0x10d   :  { %v3441_v47 = vadd.f32 %v760_v29, %v675_v18  ;;  %v678_v40 = vadd.f32 %v662_v58, %v577_v31 }
 0x10e   :  { %v710_v38 = vpop.permute.xlu1 %709  ;;  %v625_v44 = vpop.permute.xlu0 %624 }
 0x10f   :  { %v761_v42 = vmul.f32 %v3339_v45, %v710_v38  ;;  %v664_v39 = vmul.f32 %v3344_v46, %v625_v44  ;;  %v567_v44 = vmul.f32 %v3323_v27, %v3424_v14 }
 0x111   :  { %v3444_v37 = vadd.f32 %v761_v42, %v676_v34  ;;  %v766_v42 = vmul.f32 %v3339_v45, %v3359_v59  ;;  %v357_v59 = vmul.f32 %v3260_v25, %v3311_v6  ;;  %v468_v6 = vmul.f32 %v3284_v19, %v3376_v11 }
 0x113   :  { %v323_v7 = vpop.permute.xlu1 %322 }
 0x114   :  { %v356_v3 = vmul.f32 %v3260_v25, %v323_v7 }
 0x116   :  { %v379_v32 = vadd.f32 %v3270_v62, %v356_v3  ;;  %v637_v3 = vpop.permute.xlu0 %636 }
 0x117   :  { %v3509_v1 = vmul.f32 %v3344_v46, %v637_v3 }
 0x118   :  { %v718_v53 = vpop.permute.xlu1 %717 }
 0x119   :  { %v763_v10 = vmul.f32 %v3339_v45, %v718_v53 }
 0x11b   :  { %v3449_v13 = vadd.f32 %v763_v10, %v678_v40 }
 0x11d   :  { %v419_v30 = vpop.permute.xlu1 %418 }
 0x11e   :  { %v461_v41 = vmul.f32 %v3284_v19, %v419_v30 }
 0x120   :  { %v3459_v50 = vadd.f32 %v461_v41, %v376_v2 }
 0x121   :  { %v427_v31 = vpop.permute.xlu1 %426 }
 0x122   :  { %v463_v26 = vmul.f32 %v3284_v19, %v427_v31 }
 0x124   :  { %v479_v12 = vadd.f32 %v463_v26, %v378_v22  ;;  %v649_v22 = vpop.permute.xlu0 %648  ;;  %v380_v26 = vadd.f32 %v3270_v62, %v357_v59 }
 0x125   :  { %v431_v34 = vpop.permute.xlu1 %430 }
 0x126   :  { %v464_v33 = vmul.f32 %v3284_v19, %v431_v34 }
 0x128   :  { %v480_v16 = vadd.f32 %v464_v33, %v379_v32  ;;  %v742_v34 = vpop.permute.xlu0 %741  ;;  %v481_v33 = vadd.f32 %v465_v55, %v380_v26 }
 0x129   :  { %v3519_v11 = vmul.f32 %v3339_v45, %v742_v34 }
 0x12a   :  { %v524_v21 = vpop.permute.xlu1 %523 }
 0x12b   :  { %v563_v56 = vmul.f32 %v3323_v27, %v524_v21 }
 0x12d   :  { %v579_v51 = vadd.f32 %v563_v56, %v478_v24  ;;  %v578_v24 = vadd.f32 %v562_v28, %v3459_v50  ;;  %v3516_v56 = vmul.f32 %v3344_v46, %v649_v22 }
 0x12e   :  { %v528_v9 = vpop.permute.xlu1 %527 }
 0x12f   :  { %v680_v36 = vadd.f32 %v664_v39, %v579_v51  ;;  %v564_v43 = vmul.f32 %v3323_v27, %v528_v9 }
 0x131   :  { %v3477_v8 = vadd.f32 %v765_v35, %v680_v36  ;;  %v580_v29 = vadd.f32 %v564_v43, %v479_v12  ;;  %v565_v12 = vmul.f32 %v3323_v27, %v3417_v4 }
 0x133   :  { %v621_v18 = vpop.permute.xlu1 %620  ;;  %v581_v51 = vadd.f32 %v565_v12, %v480_v16 }
 0x134   :  { %v663_v35 = vmul.f32 %v3344_v46, %v621_v18 }
 0x137   :  { %v629_v63 = vpop.permute.xlu1 %628 }
 0x138   :  { %v665_v38 = vmul.f32 %v3344_v46, %v629_v63 }
 0x13a   :  { %v681_v48 = vadd.f32 %v665_v38, %v580_v29 }
 0x13b   :  { %v633_v7 = vpop.permute.xlu1 %632 }
 0x13c   :  { %v3483_v58 = vadd.f32 %v766_v42, %v681_v48  ;;  %v666_v50 = vmul.f32 %v3344_v46, %v633_v7 }
 0x13e   :  { %v682_v59 = vadd.f32 %v666_v50, %v581_v51 }
 0x140   :  { %v331_v49 = vpop.permute.xlu1 %330 }
 0x141   :  { %v358_v5 = vmul.f32 %v3260_v25, %v331_v49 }
 0x143   :  { %v381_v43 = vadd.f32 %v3270_v62, %v358_v5 }
 0x145   :  { %v722_v23 = vpop.permute.xlu1 %721 }
 0x146   :  { %v764_v22 = vmul.f32 %v3339_v45, %v722_v23 }
 0x14a   :  { %v335_v53 = vpop.permute.xlu1 %334 }
 0x14b   :  { %v359_v60 = vmul.f32 %v3260_v25, %v335_v53  ;;  %v679_v53 = vadd.f32 %v663_v35, %v578_v24 }
 0x14d   :  { %v382_v38 = vadd.f32 %v3270_v62, %v359_v60 }
 0x14e   :  { %v339_v40 = vpop.permute.xlu1 %338 }
 0x14f   :  { %v360_v16 = vmul.f32 %v3260_v25, %v339_v40 }
 0x151   :  { %v383_v26 = vadd.f32 %v3270_v62, %v360_v16 }
 0x153   :  { %v734_v10 = vpop.permute.xlu1 %733  ;;  %v484_v24 = vadd.f32 %v468_v6, %v383_v26 }
 0x158   :  { %v439_v2 = vpop.permute.xlu1 %438 }
 0x15c   :  { %v443_v30 = vpop.permute.xlu1 %442 }
 0x15d   :  { %v467_v48 = vmul.f32 %v3284_v19, %v443_v30 }
 0x15f   :  { %v483_v28 = vadd.f32 %v467_v48, %v382_v38 }
 0x161   :  { %v536_v20 = vpop.permute.xlu1 %535 }
 0x162   :  { %v566_v3 = vmul.f32 %v3323_v27, %v536_v20 }
 0x164   :  { %v582_v34 = vadd.f32 %v566_v3, %v481_v33 }
 0x165   :  { %v3485_v41 = vpop.permute.xlu1 %543 }
 0x166   :  { %v568_v5 = vmul.f32 %v3323_v27, %v3485_v41 }
 0x169   :  { %v3487_v17 = vpop.permute.xlu1 %547 }
 0x16e   :  { %v3491_v31 = vpop.permute.xlu1 %640 }
 0x16f   :  { %v668_v6 = vmul.f32 %v3344_v46, %v3491_v31 }
 0x172   :  { %v3498_v32 = vpop.permute.xlu1 %644 }
 0x173   :  { %v669_v33 = vmul.f32 %v3344_v46, %v3498_v32 }
 0x177   :  { %v738_v63 = vpop.permute.xlu1 %737 }
 0x17b   :  { %v746_v20 = vpop.permute.xlu1 %745 }
 0x17f   :  { %v2371_v57 = vpop.f32.mrb[0].mxu0  ;;  %v750_v50 = vpop.permute.xlu1 %749 }
 0x180   :  { %v3512_v21 = vadd.f32 %v2371_v57, %v3356_v54  ;;  %v871_v4 = vpop.f32.mrb[1].mxu0  ;;  %v569_v57 = vmul.f32 %v3323_v27, %v3487_v17  ;;  %v683_v27 = vadd.f32 %v3509_v1, %v582_v34  ;;  %v584_v17 = vadd.f32 %v568_v5, %v483_v28 }
 0x181   :  { %v3522_v39 = vadd.f32 %v871_v4, %v3401_v52  ;;  %v2372_v14 = vpop.f32.mrb[2].mxu0 }
 0x182   :  { %v952_v9 = vsub.f32 0.0, %v3512_v21  ;;  %v3527_v54 = vadd.f32 %v2372_v14, %v3407_v0  ;;  %v874_v36 = vpop.f32.mrb[3].mxu0  ;;  %v466_v0 = vmul.f32 %v3284_v19, %v439_v2  ;;  %v767_v2 = vmul.f32 %v3339_v45, %v734_v10 }
 0x183   :  { %v950_v29 = vsub.f32 0.0, %v3522_v39  ;;  %v3533_v52 = vadd.f32 %v874_v36, %v3438_v61  ;;  %v685_v38 = vadd.f32 %v669_v33, %v584_v17 }
 0x184   :  { %v970_v18 = vmul.f32 1.442695, %v952_v9  ;;  %v953_v42 = vsub.f32 0.0, %v3527_v54  ;;  %v482_v55 = vadd.f32 %v466_v0, %v381_v43  ;;  %v783_v9 = vadd.f32 %v767_v2, %v682_v59 }
 0x185   :  { %v966_v7 = vmul.f32 1.442695, %v950_v29  ;;  %v951_v49 = vsub.f32 0.0, %v3533_v52 }
 0x186   :  { %2601 = vpow2.f32 %v970_v18  ;;  %v972_v61 = vmul.f32 1.442695, %v953_v42  ;;  %v583_v35 = vadd.f32 %v567_v44, %v482_v55  ;;  %v768_v44 = vmul.f32 %v3339_v45, %v738_v63 }
 0x187   :  { %2603 = vpow2.f32 %v966_v7  ;;  %v968_v25 = vmul.f32 1.442695, %v951_v49  ;;  %v770_v42 = vmul.f32 %v3339_v45, %v746_v20  ;;  %v771_v7 = vmul.f32 %v3339_v45, %v750_v50 }
 0x188   :  { %v2375_v40 = vpop.f32.mrb[4].mxu0  ;;  %2605 = vpow2.f32 %v972_v61  ;;  %v684_v45 = vadd.f32 %v668_v6, %v583_v35 }
 0x189   :  { %v3546_v19 = vadd.f32 %v2375_v40, %v3435_v15  ;;  %v887_v30 = vpop.f32.mrb[5].mxu0  ;;  %2607 = vpow2.f32 %v968_v25  ;;  %v786_v20 = vadd.f32 %v770_v42, %v685_v38 }
 0x18a   :  { %v3549_v12 = vadd.f32 %v887_v30, %v3441_v47  ;;  %v2376_v23 = vpop.f32.mrb[6].mxu0  ;;  %v780_v47 = vadd.f32 %v764_v22, %v679_v53 }
 0x18b   :  { %v956_v62 = vsub.f32 0.0, %v3546_v19  ;;  %v3555_v10 = vadd.f32 %v2376_v23, %v3449_v13  ;;  %v890_v15 = vpop.f32.mrb[7].mxu0 }
 0x18c   :  { %v954_v60 = vsub.f32 0.0, %v3549_v12  ;;  %v3561_v4 = vadd.f32 %v890_v15, %v3444_v37  ;;  %v585_v37 = vadd.f32 %v569_v57, %v484_v24 }
 0x18d   :  { %v978_v41 = vmul.f32 1.442695, %v956_v62  ;;  %v957_v14 = vsub.f32 0.0, %v3555_v10 }
 0x18e   :  { %v974_v13 = vmul.f32 1.442695, %v954_v60  ;;  %v955_v51 = vsub.f32 0.0, %v3561_v4  ;;  %v686_v55 = vadd.f32 %v3516_v56, %v585_v37  ;;  %v785_v56 = vadd.f32 %v3519_v11, %v684_v45 }
 0x18f   :  { %2609 = vpow2.f32 %v978_v41  ;;  %v980_v36 = vmul.f32 1.442695, %v957_v14 }
 0x190   :  { %2611 = vpow2.f32 %v974_v13  ;;  %v976_v32 = vmul.f32 1.442695, %v955_v51  ;;  %v2379_v43 = vpop.f32.mrb[8].mxu0  ;;  %v2602_v29 = vpop.eup %2601  ;;  %v787_v57 = vadd.f32 %v771_v7, %v686_v55 }
 0x191   :  { %2613 = vpow2.f32 %v980_v36  ;;  %v3572_v16 = vadd.f32 %v2379_v43, %v3483_v58  ;;  %v903_v1 = vpop.f32.mrb[9].mxu0  ;;  %v2604_v18 = vpop.eup %2603  ;;  %v1000_v0 = vadd.f32 1.0, %v2602_v29 }
 0x192   :  { %2615 = vpow2.f32 %v976_v32  ;;  %v3575_v48 = vadd.f32 %v903_v1, %v780_v47  ;;  %v2380_v46 = vpop.f32.mrb[10].mxu0  ;;  %v2606_v31 = vpop.eup %2605  ;;  %v998_v49 = vadd.f32 1.0, %v2604_v18 }
 0x193   :  { %v960_v53 = vsub.f32 0.0, %v3572_v16  ;;  %v3579_v63 = vadd.f32 %v2380_v46, %v783_v9  ;;  %v906_v3 = vpop.f32.mrb[11].mxu0  ;;  %v2608_v58 = vpop.eup %2607  ;;  %2617 = vrcp.f32 %v1000_v0  ;;  %v1001_v61 = vadd.f32 1.0, %v2606_v31 }
 0x194   :  { %v958_v59 = vsub.f32 0.0, %v3575_v48  ;;  %v3583_v22 = vadd.f32 %v906_v3, %v3477_v8  ;;  %2619 = vrcp.f32 %v998_v49  ;;  %v999_v25 = vadd.f32 1.0, %v2608_v58 }
 0x195   :  { %v986_v40 = vmul.f32 1.442695, %v960_v53  ;;  %v961_v26 = vsub.f32 0.0, %v3579_v63  ;;  %2621 = vrcp.f32 %v1001_v61  ;;  %v784_v8 = vadd.f32 %v768_v44, %v683_v27 }
 0x196   :  { %v982_v2 = vmul.f32 1.442695, %v958_v59  ;;  %v959_v30 = vsub.f32 0.0, %v3583_v22  ;;  %2623 = vrcp.f32 %v999_v25 }
 0x197   :  { %v988_v28 = vmul.f32 1.442695, %v961_v26  ;;  %2625 = vpow2.f32 %v986_v40 }
 0x198   :  { %v984_v23 = vmul.f32 1.442695, %v959_v30  ;;  %v2383_v34 = vpop.f32.mrb[12].mxu0  ;;  %2627 = vpow2.f32 %v982_v2 }
 0x199   :  { %v2610_v5 = vpop.eup %2609  ;;  %v3588_v62 = vadd.f32 %v2383_v34, %v786_v20  ;;  %v919_v15 = vpop.f32.mrb[13].mxu0  ;;  %2629 = vpow2.f32 %v988_v28 }
 0x19a   :  { %v2612_v60 = vpop.eup %2611  ;;  %v1004_v47 = vadd.f32 1.0, %v2610_v5  ;;  %v3590_v24 = vadd.f32 %v919_v15, %v784_v8  ;;  %v2384_v33 = vpop.f32.mrb[14].mxu0  ;;  %2631 = vpow2.f32 %v984_v23 }
 0x19b   :  { %v2614_v41 = vpop.eup %2613  ;;  %v1002_v14 = vadd.f32 1.0, %v2612_v60  ;;  %v964_v35 = vsub.f32 0.0, %v3588_v62  ;;  %v3594_v13 = vadd.f32 %v2384_v33, %v787_v57  ;;  %v922_v51 = vpop.f32.mrb[15].mxu0 }
 0x19c   :  { %v2616_v9 = vpop.eup %2615  ;;  %2633 = vrcp.f32 %v1004_v47  ;;  %v1005_v27 = vadd.f32 1.0, %v2614_v41  ;;  %v962_v17 = vsub.f32 0.0, %v3590_v24  ;;  %v3597_v36 = vadd.f32 %v922_v51, %v785_v56 }
 0x19d   :  { %2635 = vrcp.f32 %v1002_v14  ;;  %v1003_v37 = vadd.f32 1.0, %v2616_v9  ;;  %v994_v6 = vmul.f32 1.442695, %v964_v35  ;;  %v965_v11 = vsub.f32 0.0, %v3594_v13  ;;  %v2618_v50 = vpop.eup %2617 }
 0x19e   :  { %2637 = vrcp.f32 %v1005_v27  ;;  %v990_v32 = vmul.f32 1.442695, %v962_v17  ;;  %v963_v43 = vsub.f32 0.0, %v3597_v36  ;;  %v2620_v29 = vpop.eup %2619  ;;  %v1032_v42 = vmul.f32 %v2618_v50, %v3512_v21  ;;  %v2529_v50 = vld [vmem:[%s4094_s6 + $0x10] sm:$0xff]  }
 0x19f   :  { %2639 = vrcp.f32 %v1003_v37  ;;  %v996_v38 = vmul.f32 1.442695, %v965_v11  ;;  %v2622_v44 = vpop.eup %2621  ;;  %v1030_v31 = vmul.f32 %v2620_v29, %v3522_v39  ;;  %2405 = vmatprep.subr.bf16.mxu0 %v2529_v50 }
 0x1a0   :  { %2641 = vpow2.f32 %v994_v6  ;;  %v992_v1 = vmul.f32 1.442695, %v963_v43  ;;  %v2624_v18 = vpop.eup %2623  ;;  %v1033_v0 = vmul.f32 %v2622_v44, %v3527_v54  ;;  %2406 = vmatpush3.bf16.msra.mxu0 %v2529_v50 }
 0x1a1   :  { %2643 = vpow2.f32 %v990_v32  ;;  %v2626_v46 = vpop.eup %2625  ;;  %v1031_v7 = vmul.f32 %v2624_v18, %v3533_v52 }
 0x1a2   :  { %2645 = vpow2.f32 %v996_v38  ;;  %v2628_v49 = vpop.eup %2627  ;;  %v1047_v53 = vpack.c.bf16 %v1033_v0, %v1032_v42  ;;  %v1008_v3 = vadd.f32 1.0, %v2626_v46 }
 0x1a3   :  { %2647 = vpow2.f32 %v992_v1  ;;  %v2630_v58 = vpop.eup %2629  ;;  %v1006_v61 = vadd.f32 1.0, %v2628_v49  ;;  %v1046_v59 = vpack.c.bf16 %v1031_v7, %v1030_v31 }
 0x1a4   :  { %v2632_v25 = vpop.eup %2631  ;;  %2649 = vrcp.f32 %v1008_v3  ;;  %v1009_v40 = vadd.f32 1.0, %v2630_v58 }
 0x1a5   :  { %2651 = vrcp.f32 %v1006_v61  ;;  %v1007_v54 = vadd.f32 1.0, %v2632_v25  ;;  %2389 = vmatprep.mubr.msk.bf16.mxu1 %vm812_vm0, %v1046_v59 }
 0x1a6   :  { %v2634_v21 = vpop.eup %2633  ;;  %2653 = vrcp.f32 %v1009_v40  ;;  %2390 = vmatmul.mubr.msk.bf16.vlgmr.msra.gmra.mrb[0].mxu1 %vm812_vm0, %v1047_v53 }
 0x1a7   :  { %v2636_v26 = vpop.eup %2635  ;;  %2655 = vrcp.f32 %v1007_v54  ;;  %v1036_v45 = vmul.f32 %v2634_v21, %v3546_v19 }
 0x1a8   :  { %v2638_v39 = vpop.eup %2637  ;;  %v1034_v55 = vmul.f32 %v2636_v26, %v3549_v12 }
 0x1a9   :  { %v2640_v52 = vpop.eup %2639  ;;  %v1037_v2 = vmul.f32 %v2638_v39, %v3555_v10 }
 0x1aa   :  { %v2642_v30 = vpop.eup %2641  ;;  %v1035_v28 = vmul.f32 %v2640_v52, %v3561_v4 }
 0x1ab   :  { %v2644_v20 = vpop.eup %2643  ;;  %v1049_v23 = vpack.c.bf16 %v1037_v2, %v1036_v45  ;;  %v1012_v34 = vadd.f32 1.0, %v2642_v30 }
 0x1ac   :  { %v2646_v8 = vpop.eup %2645  ;;  %v1048_v5 = vpack.c.bf16 %v1035_v28, %v1034_v55  ;;  %v1010_v15 = vadd.f32 1.0, %v2644_v20 }
 0x1ad   :  { %v2648_v57 = vpop.eup %2647  ;;  %2657 = vrcp.f32 %v1012_v34  ;;  %v1013_v60 = vadd.f32 1.0, %v2646_v8 }
 0x1ae   :  { %2659 = vrcp.f32 %v1010_v15  ;;  %v1011_v47 = vadd.f32 1.0, %v2648_v57  ;;  %2393 = vmatprep.mubr.msk.bf16.mxu1 %vm812_vm0, %v1048_v5  ;;  %v2650_v19 = vpop.eup %2649 }
 0x1af   :  { %2661 = vrcp.f32 %v1013_v60  ;;  %2394 = vmatmul.mubr.msk.bf16.gmra.mrb[4].mxu1 %vm812_vm0, %v1049_v23  ;;  %v2652_v12 = vpop.eup %2651  ;;  %v1040_v33 = vmul.f32 %v2650_v19, %v3572_v16 }
 0x1b0   :  { %2663 = vrcp.f32 %v1011_v47  ;;  %v2654_v10 = vpop.eup %2653  ;;  %v1038_v41 = vmul.f32 %v2652_v12, %v3575_v48 }
 0x1b1   :  { %v2656_v4 = vpop.eup %2655  ;;  %v1041_v56 = vmul.f32 %v2654_v10, %v3579_v63 }
 0x1b2   :  { %v1039_v14 = vmul.f32 %v2656_v4, %v3583_v22 }
 0x1b3   :  { %v1051_v35 = vpack.c.bf16 %v1041_v56, %v1040_v33 }
 0x1b4   :  { %v1050_v51 = vpack.c.bf16 %v1039_v14, %v1038_v41 }
 0x1b6   :  { %2397 = vmatprep.mubr.msk.bf16.mxu1 %vm812_vm0, %v1050_v51 }
 0x1b7   :  { %v2658_v9 = vpop.eup %2657  ;;  %2398 = vmatmul.mubr.msk.bf16.gmra.mrb[8].mxu1 %vm812_vm0, %v1051_v35 }
 0x1b8   :  { %v2660_v27 = vpop.eup %2659  ;;  %v1044_v6 = vmul.f32 %v2658_v9, %v3588_v62  ;;  %v2530_v62 = vld [vmem:[%s4094_s6 + $0x18] sm:$0xff]  }
 0x1b9   :  { %v2662_v17 = vpop.eup %2661  ;;  %v1042_v63 = vmul.f32 %v2660_v27, %v3590_v24  ;;  %2407 = vmatprep.subr.bf16.mxu0 %v2530_v62  ;;  %v3634_v24 = vld [vmem:[%s4095_s7] ss:$0 sm:$0xff] }
 0x1ba   :  { %v2664_v37 = vpop.eup %2663  ;;  %v1045_v16 = vmul.f32 %v2662_v17, %v3594_v13  ;;  %2408 = vmatpush3.bf16.msra.mxu0 %v2530_v62 }
 0x1bb   :  { %v1043_v48 = vmul.f32 %v2664_v37, %v3597_v36 }
 0x1bc   :  { %v1053_v11 = vpack.c.bf16 %v1045_v16, %v1044_v6 }
 0x1bd   :  { %v1052_v22 = vpack.c.bf16 %v1043_v48, %v1042_v63 }
 0x1bf   :  { %2401 = vmatprep.mubr.msk.bf16.mxu1 %vm812_vm0, %v1052_v22 }
 0x1c0   :  { %2402 = vmatmul.mubr.msk.bf16.gmra.mrb[12].mxu1 %vm812_vm0, %v1053_v11 }
 0x279   :  { %v2391_v13 = vpop.f32.mrb[0].mxu1 }
 0x27a   :  { %v3637_v36 = vadd.f32 %v2391_v13, %v3634_v24  ;;  %v1135_v32 = vpop.f32.mrb[1].mxu1 }
 0x27b   :  { %v3640_v43 = vadd.f32 %v3634_v24, %v1135_v32  ;;  %v2392_v29 = vpop.f32.mrb[2].mxu1 }
 0x27c   :  { %v1200_v38 = vsub.f32 0.0, %v3637_v36  ;;  %v3644_v44 = vadd.f32 %v2392_v29, %v3634_v24  ;;  %v1138_v1 = vpop.f32.mrb[3].mxu1 }
 0x27d   :  { %v1198_v18 = vsub.f32 0.0, %v3640_v43  ;;  %v3648_v42 = vadd.f32 %v3634_v24, %v1138_v1 }
 0x27e   :  { %v1218_v0 = vmul.f32 1.442695, %v1200_v38  ;;  %v1201_v46 = vsub.f32 0.0, %v3644_v44 }
 0x27f   :  { %v1214_v31 = vmul.f32 1.442695, %v1198_v18  ;;  %v1199_v7 = vsub.f32 0.0, %v3648_v42 }
 0x280   :  { %2665 = vpow2.f32 %v1218_v0  ;;  %v1220_v49 = vmul.f32 1.442695, %v1201_v46 }
 0x281   :  { %2667 = vpow2.f32 %v1214_v31  ;;  %v1216_v53 = vmul.f32 1.442695, %v1199_v7 }
 0x282   :  { %v2395_v3 = vpop.f32.mrb[4].mxu1  ;;  %2669 = vpow2.f32 %v1220_v49 }
 0x283   :  { %v3653_v58 = vadd.f32 %v2395_v3, %v3634_v24  ;;  %v1151_v61 = vpop.f32.mrb[5].mxu1  ;;  %2671 = vpow2.f32 %v1216_v53 }
 0x284   :  { %v3656_v59 = vadd.f32 %v3634_v24, %v1151_v61  ;;  %v2396_v25 = vpop.f32.mrb[6].mxu1 }
 0x285   :  { %v1204_v40 = vsub.f32 0.0, %v3653_v58  ;;  %v3660_v21 = vadd.f32 %v2396_v25, %v3634_v24  ;;  %v1154_v54 = vpop.f32.mrb[7].mxu1 }
 0x286   :  { %v1202_v26 = vsub.f32 0.0, %v3656_v59  ;;  %v3664_v39 = vadd.f32 %v3634_v24, %v1154_v54 }
 0x287   :  { %v1226_v52 = vmul.f32 1.442695, %v1204_v40  ;;  %v1205_v45 = vsub.f32 0.0, %v3660_v21 }
 0x288   :  { %v1222_v2 = vmul.f32 1.442695, %v1202_v26  ;;  %v1203_v30 = vsub.f32 0.0, %v3664_v39 }
 0x289   :  { %2673 = vpow2.f32 %v1226_v52  ;;  %v1228_v55 = vmul.f32 1.442695, %v1205_v45 }
 0x28a   :  { %2675 = vpow2.f32 %v1222_v2  ;;  %v1224_v28 = vmul.f32 1.442695, %v1203_v30  ;;  %v2666_v20 = vpop.eup %2665  ;;  %v2399_v23 = vpop.f32.mrb[8].mxu1 }
 0x28b   :  { %2677 = vpow2.f32 %v1228_v55  ;;  %v2668_v34 = vpop.eup %2667  ;;  %v1248_v8 = vadd.f32 1.0, %v2666_v20  ;;  %v3669_v5 = vadd.f32 %v2399_v23, %v3634_v24  ;;  %v1167_v15 = vpop.f32.mrb[9].mxu1 }
 0x28c   :  { %2679 = vpow2.f32 %v1224_v28  ;;  %v2670_v57 = vpop.eup %2669  ;;  %v1246_v60 = vadd.f32 1.0, %v2668_v34  ;;  %v3672_v47 = vadd.f32 %v3634_v24, %v1167_v15  ;;  %v2400_v19 = vpop.f32.mrb[10].mxu1 }
 0x28d   :  { %v2672_v12 = vpop.eup %2671  ;;  %2681 = vrcp.f32 %v1248_v8  ;;  %v1249_v10 = vadd.f32 1.0, %v2670_v57  ;;  %v1208_v4 = vsub.f32 0.0, %v3669_v5  ;;  %v3676_v33 = vadd.f32 %v2400_v19, %v3634_v24  ;;  %v1170_v56 = vpop.f32.mrb[11].mxu1 }
 0x28e   :  { %2683 = vrcp.f32 %v1246_v60  ;;  %v1247_v41 = vadd.f32 1.0, %v2672_v12  ;;  %v1206_v14 = vsub.f32 0.0, %v3672_v47  ;;  %v3680_v35 = vadd.f32 %v3634_v24, %v1170_v56 }
 0x28f   :  { %2685 = vrcp.f32 %v1249_v10  ;;  %v1234_v51 = vmul.f32 1.442695, %v1208_v4  ;;  %v1209_v9 = vsub.f32 0.0, %v3676_v33 }
 0x290   :  { %2687 = vrcp.f32 %v1247_v41  ;;  %v1230_v27 = vmul.f32 1.442695, %v1206_v14  ;;  %v1207_v17 = vsub.f32 0.0, %v3680_v35 }
 0x291   :  { %2689 = vpow2.f32 %v1234_v51  ;;  %v1236_v37 = vmul.f32 1.442695, %v1209_v9 }
 0x292   :  { %2691 = vpow2.f32 %v1230_v27  ;;  %v1232_v16 = vmul.f32 1.442695, %v1207_v17 }
 0x293   :  { %v2674_v6 = vpop.eup %2673  ;;  %v2403_v63 = vpop.f32.mrb[12].mxu1  ;;  %2693 = vpow2.f32 %v1236_v37 }
 0x294   :  { %v2676_v48 = vpop.eup %2675  ;;  %v1252_v11 = vadd.f32 1.0, %v2674_v6  ;;  %v3685_v22 = vadd.f32 %v2403_v63, %v3634_v24  ;;  %v1183_v50 = vpop.f32.mrb[13].mxu1  ;;  %2695 = vpow2.f32 %v1232_v16 }
 0x295   :  { %v2678_v62 = vpop.eup %2677  ;;  %v1250_v13 = vadd.f32 1.0, %v2676_v48  ;;  %v3688_v32 = vadd.f32 %v3634_v24, %v1183_v50  ;;  %v2404_v29 = vpop.f32.mrb[14].mxu1 }
 0x296   :  { %v2680_v38 = vpop.eup %2679  ;;  %2697 = vrcp.f32 %v1252_v11  ;;  %v1253_v1 = vadd.f32 1.0, %v2678_v62  ;;  %v1212_v18 = vsub.f32 0.0, %v3685_v22  ;;  %v3692_v0 = vadd.f32 %v2404_v29, %v3634_v24  ;;  %v1186_v46 = vpop.f32.mrb[15].mxu1 }
 0x297   :  { %2699 = vrcp.f32 %v1250_v13  ;;  %v1251_v31 = vadd.f32 1.0, %v2680_v38  ;;  %v1210_v7 = vsub.f32 0.0, %v3688_v32  ;;  %v3696_v49 = vadd.f32 %v3634_v24, %v1186_v46  ;;  %v2682_v53 = vpop.eup %2681 }
 0x298   :  { %2701 = vrcp.f32 %v1253_v1  ;;  %v1242_v3 = vmul.f32 1.442695, %v1212_v18  ;;  %v1213_v61 = vsub.f32 0.0, %v3692_v0  ;;  %v2684_v25 = vpop.eup %2683  ;;  %v1280_v2 = vmul.f32 %v2682_v53, %v3637_v36 }
 0x299   :  { %2703 = vrcp.f32 %v1251_v31  ;;  %v1238_v40 = vmul.f32 1.442695, %v1210_v7  ;;  %v1211_v54 = vsub.f32 0.0, %v3696_v49  ;;  %v2686_v26 = vpop.eup %2685  ;;  %v1278_v28 = vmul.f32 %v2684_v25, %v3640_v43 }
 0x29a   :  { %2705 = vpow2.f32 %v1242_v3  ;;  %v1244_v52 = vmul.f32 1.442695, %v1213_v61  ;;  %v2688_v45 = vpop.eup %2687  ;;  %v1281_v30 = vmul.f32 %v2686_v26, %v3644_v44  ;;  %v2531_v61 = vld [vmem:[%s4094_s6 + $0x20] sm:$0xff]  }
 0x29b   :  { %2707 = vpow2.f32 %v1238_v40  ;;  %v1240_v24 = vmul.f32 1.442695, %v1211_v54  ;;  %v2690_v55 = vpop.eup %2689  ;;  %v1279_v20 = vmul.f32 %v2688_v45, %v3648_v42  ;;  %2425 = vmatprep.subr.bf16.mxu1 %v2531_v61 }
 0x29c   :  { %2709 = vpow2.f32 %v1244_v52  ;;  %v2692_v23 = vpop.eup %2691  ;;  %v1295_v34 = vpack.c.bf16 %v1281_v30, %v1280_v2  ;;  %v1256_v8 = vadd.f32 1.0, %v2690_v55  ;;  %2426 = vmatpush3.bf16.msra.mxu1 %v2531_v61 }
 0x29d   :  { %2711 = vpow2.f32 %v1240_v24  ;;  %v2694_v15 = vpop.eup %2693  ;;  %v1294_v57 = vpack.c.bf16 %v1279_v20, %v1278_v28  ;;  %v1254_v60 = vadd.f32 1.0, %v2692_v23 }
 0x29e   :  { %v2696_v19 = vpop.eup %2695  ;;  %2713 = vrcp.f32 %v1256_v8  ;;  %v1257_v36 = vadd.f32 1.0, %v2694_v15 }
 0x29f   :  { %2715 = vrcp.f32 %v1254_v60  ;;  %v1255_v44 = vadd.f32 1.0, %v2696_v19  ;;  %2409 = vmatprep.mubr.msk.bf16.mxu0 %vm812_vm0, %v1294_v57 }
 0x2a0   :  { %v2698_v12 = vpop.eup %2697  ;;  %2717 = vrcp.f32 %v1257_v36  ;;  %2410 = vmatmul.mubr.msk.bf16.vlgmr.msra.gmra.mrb[16].mxu0 %vm812_vm0, %v1295_v34 }
 0x2a1   :  { %v2700_v10 = vpop.eup %2699  ;;  %2719 = vrcp.f32 %v1255_v44  ;;  %v1284_v4 = vmul.f32 %v2698_v12, %v3653_v58 }
 0x2a2   :  { %v2702_v43 = vpop.eup %2701  ;;  %v1282_v14 = vmul.f32 %v2700_v10, %v3656_v59 }
 0x2a3   :  { %v2704_v42 = vpop.eup %2703  ;;  %v1285_v56 = vmul.f32 %v2702_v43, %v3660_v21 }
 0x2a4   :  { %v2706_v41 = vpop.eup %2705  ;;  %v1283_v51 = vmul.f32 %v2704_v42, %v3664_v39 }
 0x2a5   :  { %v2708_v9 = vpop.eup %2707  ;;  %v1297_v27 = vpack.c.bf16 %v1285_v56, %v1284_v4  ;;  %v1260_v17 = vadd.f32 1.0, %v2706_v41 }
 0x2a6   :  { %v2710_v37 = vpop.eup %2709  ;;  %v1296_v6 = vpack.c.bf16 %v1283_v51, %v1282_v14  ;;  %v1258_v16 = vadd.f32 1.0, %v2708_v9 }
 0x2a7   :  { %v2712_v63 = vpop.eup %2711  ;;  %2721 = vrcp.f32 %v1260_v17  ;;  %v1261_v48 = vadd.f32 1.0, %v2710_v37 }
 0x2a8   :  { %2723 = vrcp.f32 %v1258_v16  ;;  %v1259_v11 = vadd.f32 1.0, %v2712_v63  ;;  %2413 = vmatprep.mubr.msk.bf16.mxu0 %vm812_vm0, %v1296_v6  ;;  %v2714_v58 = vpop.eup %2713 }
 0x2a9   :  { %2725 = vrcp.f32 %v1261_v48  ;;  %2414 = vmatmul.mubr.msk.bf16.gmra.mrb[20].mxu0 %vm812_vm0, %v1297_v27  ;;  %v2716_v59 = vpop.eup %2715  ;;  %v1288_v50 = vmul.f32 %v2714_v58, %v3669_v5 }
 0x2aa   :  { %2727 = vrcp.f32 %v1259_v11  ;;  %v2718_v21 = vpop.eup %2717  ;;  %v1286_v13 = vmul.f32 %v2716_v59, %v3672_v47 }
 0x2ab   :  { %v2720_v39 = vpop.eup %2719  ;;  %v1289_v62 = vmul.f32 %v2718_v21, %v3676_v33 }
 0x2ac   :  { %v1287_v29 = vmul.f32 %v2720_v39, %v3680_v35 }
 0x2ad   :  { %v1299_v38 = vpack.c.bf16 %v1289_v62, %v1288_v50 }
 0x2ae   :  { %v1298_v1 = vpack.c.bf16 %v1287_v29, %v1286_v13 }
 0x2b0   :  { %2417 = vmatprep.mubr.msk.bf16.mxu0 %vm812_vm0, %v1298_v1 }
 0x2b1   :  { %v2722_v18 = vpop.eup %2721  ;;  %2418 = vmatmul.mubr.msk.bf16.gmra.mrb[24].mxu0 %vm812_vm0, %v1299_v38 }
 0x2b2   :  { %v2724_v46 = vpop.eup %2723  ;;  %v1292_v53 = vmul.f32 %v2722_v18, %v3685_v22  ;;  %v2532_v22 = vld [vmem:[%s4094_s6 + $0x28] sm:$0xff]  }
 0x2b3   :  { %v2726_v31 = vpop.eup %2725  ;;  %v1290_v33 = vmul.f32 %v2724_v46, %v3688_v32  ;;  %2427 = vmatprep.subr.bf16.mxu1 %v2532_v22  ;;  %v3733_v32 = vld [vmem:[%s4095_s7 + $0x1] ss:$0 sm:$0xff] }
 0x2b4   :  { %v2728_v7 = vpop.eup %2727  ;;  %v1293_v5 = vmul.f32 %v2726_v31, %v3692_v0  ;;  %2428 = vmatpush3.bf16.msra.mxu1 %v2532_v22 }
 0x2b5   :  { %v1291_v47 = vmul.f32 %v2728_v7, %v3696_v49 }
 0x2b6   :  { %v1301_v3 = vpack.c.bf16 %v1293_v5, %v1292_v53 }
 0x2b7   :  { %v1300_v35 = vpack.c.bf16 %v1291_v47, %v1290_v33 }
 0x2b9   :  { %2421 = vmatprep.mubr.msk.bf16.mxu0 %vm812_vm0, %v1300_v35 }
 0x2ba   :  { %2422 = vmatmul.mubr.msk.bf16.gmra.mrb[28].mxu0 %vm812_vm0, %v1301_v3 }
 0x373   :  { %v2411_v0 = vpop.f32.mrb[16].mxu0 }
 0x374   :  { %v3736_v49 = vadd.f32 %v2411_v0, %v3733_v32  ;;  %v1385_v25 = vpop.f32.mrb[17].mxu0 }
 0x375   :  { %v3739_v40 = vadd.f32 %v3733_v32, %v1385_v25  ;;  %v2412_v54 = vpop.f32.mrb[18].mxu0 }
 0x376   :  { %v1450_v26 = vsub.f32 0.0, %v3736_v49  ;;  %v3743_v52 = vadd.f32 %v2412_v54, %v3733_v32  ;;  %v1388_v45 = vpop.f32.mrb[19].mxu0 }
 0x377   :  { %v1448_v2 = vsub.f32 0.0, %v3739_v40  ;;  %v3747_v30 = vadd.f32 %v3733_v32, %v1388_v45 }
 0x378   :  { %v1468_v24 = vmul.f32 1.442695, %v1450_v26  ;;  %v1451_v55 = vsub.f32 0.0, %v3743_v52 }
 0x379   :  { %v1464_v28 = vmul.f32 1.442695, %v1448_v2  ;;  %v1449_v20 = vsub.f32 0.0, %v3747_v30 }
 0x37a   :  { %2729 = vpow2.f32 %v1468_v24  ;;  %v1470_v23 = vmul.f32 1.442695, %v1451_v55 }
 0x37b   :  { %2731 = vpow2.f32 %v1464_v28  ;;  %v1466_v34 = vmul.f32 1.442695, %v1449_v20 }
 0x37c   :  { %v2415_v8 = vpop.f32.mrb[20].mxu0  ;;  %2733 = vpow2.f32 %v1470_v23 }
 0x37d   :  { %v3752_v15 = vadd.f32 %v2415_v8, %v3733_v32  ;;  %v1401_v57 = vpop.f32.mrb[21].mxu0  ;;  %2735 = vpow2.f32 %v1466_v34 }
 0x37e   :  { %v3755_v60 = vadd.f32 %v3733_v32, %v1401_v57  ;;  %v2416_v19 = vpop.f32.mrb[22].mxu0 }
 0x37f   :  { %v1454_v36 = vsub.f32 0.0, %v3752_v15  ;;  %v3759_v12 = vadd.f32 %v2416_v19, %v3733_v32  ;;  %v1404_v44 = vpop.f32.mrb[23].mxu0 }
 0x380   :  { %v1452_v10 = vsub.f32 0.0, %v3755_v60  ;;  %v3763_v43 = vadd.f32 %v3733_v32, %v1404_v44 }
 0x381   :  { %v1476_v42 = vmul.f32 1.442695, %v1454_v36  ;;  %v1455_v4 = vsub.f32 0.0, %v3759_v12 }
 0x382   :  { %v1472_v56 = vmul.f32 1.442695, %v1452_v10  ;;  %v1453_v41 = vsub.f32 0.0, %v3763_v43 }
 0x383   :  { %2737 = vpow2.f32 %v1476_v42  ;;  %v1478_v14 = vmul.f32 1.442695, %v1455_v4 }
 0x384   :  { %2739 = vpow2.f32 %v1472_v56  ;;  %v1474_v51 = vmul.f32 1.442695, %v1453_v41  ;;  %v2730_v9 = vpop.eup %2729  ;;  %v2419_v27 = vpop.f32.mrb[24].mxu0 }
 0x385   :  { %2741 = vpow2.f32 %v1478_v14  ;;  %v2732_v17 = vpop.eup %2731  ;;  %v1498_v37 = vadd.f32 1.0, %v2730_v9  ;;  %v3768_v6 = vadd.f32 %v2419_v27, %v3733_v32  ;;  %v1417_v16 = vpop.f32.mrb[25].mxu0 }
 0x386   :  { %2743 = vpow2.f32 %v1474_v51  ;;  %v2734_v63 = vpop.eup %2733  ;;  %v1496_v48 = vadd.f32 1.0, %v2732_v17  ;;  %v3771_v11 = vadd.f32 %v3733_v32, %v1417_v16  ;;  %v2420_v58 = vpop.f32.mrb[26].mxu0 }
 0x387   :  { %v2736_v59 = vpop.eup %2735  ;;  %2745 = vrcp.f32 %v1498_v37  ;;  %v1499_v21 = vadd.f32 1.0, %v2734_v63  ;;  %v1458_v39 = vsub.f32 0.0, %v3768_v6  ;;  %v3775_v50 = vadd.f32 %v2420_v58, %v3733_v32  ;;  %v1420_v62 = vpop.f32.mrb[27].mxu0 }
 0x388   :  { %2747 = vrcp.f32 %v1496_v48  ;;  %v1497_v13 = vadd.f32 1.0, %v2736_v59  ;;  %v1456_v29 = vsub.f32 0.0, %v3771_v11  ;;  %v3779_v38 = vadd.f32 %v3733_v32, %v1420_v62 }
 0x389   :  { %2749 = vrcp.f32 %v1499_v21  ;;  %v1484_v1 = vmul.f32 1.442695, %v1458_v39  ;;  %v1459_v18 = vsub.f32 0.0, %v3775_v50 }
 0x38a   :  { %2751 = vrcp.f32 %v1497_v13  ;;  %v1480_v46 = vmul.f32 1.442695, %v1456_v29  ;;  %v1457_v31 = vsub.f32 0.0, %v3779_v38 }
 0x38b   :  { %2753 = vpow2.f32 %v1484_v1  ;;  %v1486_v7 = vmul.f32 1.442695, %v1459_v18 }
 0x38c   :  { %2755 = vpow2.f32 %v1480_v46  ;;  %v1482_v5 = vmul.f32 1.442695, %v1457_v31 }
 0x38d   :  { %v2738_v53 = vpop.eup %2737  ;;  %v2423_v33 = vpop.f32.mrb[28].mxu0  ;;  %2757 = vpow2.f32 %v1486_v7 }
 0x38e   :  { %v2740_v47 = vpop.eup %2739  ;;  %v1502_v3 = vadd.f32 1.0, %v2738_v53  ;;  %v3784_v35 = vadd.f32 %v2423_v33, %v3733_v32  ;;  %v1433_v61 = vpop.f32.mrb[29].mxu0  ;;  %2759 = vpow2.f32 %v1482_v5 }
 0x38f   :  { %v2742_v22 = vpop.eup %2741  ;;  %v1500_v0 = vadd.f32 1.0, %v2740_v47  ;;  %v3787_v25 = vadd.f32 %v3733_v32, %v1433_v61  ;;  %v2424_v54 = vpop.f32.mrb[30].mxu0 }
 0x390   :  { %v2744_v26 = vpop.eup %2743  ;;  %2761 = vrcp.f32 %v1502_v3  ;;  %v1503_v45 = vadd.f32 1.0, %v2742_v22  ;;  %v1462_v2 = vsub.f32 0.0, %v3784_v35  ;;  %v3791_v24 = vadd.f32 %v2424_v54, %v3733_v32  ;;  %v1436_v55 = vpop.f32.mrb[31].mxu0 }
 0x391   :  { %2763 = vrcp.f32 %v1500_v0  ;;  %v1501_v28 = vadd.f32 1.0, %v2744_v26  ;;  %v1460_v20 = vsub.f32 0.0, %v3787_v25  ;;  %v3795_v23 = vadd.f32 %v3733_v32, %v1436_v55  ;;  %v2746_v34 = vpop.eup %2745 }
 0x392   :  { %2765 = vrcp.f32 %v1503_v45  ;;  %v1492_v8 = vmul.f32 1.442695, %v1462_v2  ;;  %v1463_v57 = vsub.f32 0.0, %v3791_v24  ;;  %v2748_v19 = vpop.eup %2747  ;;  %v1530_v56 = vmul.f32 %v2746_v34, %v3736_v49 }
 0x393   :  { %2767 = vrcp.f32 %v1501_v28  ;;  %v1488_v36 = vmul.f32 1.442695, %v1460_v20  ;;  %v1461_v44 = vsub.f32 0.0, %v3795_v23  ;;  %v2750_v10 = vpop.eup %2749  ;;  %v1528_v51 = vmul.f32 %v2748_v19, %v3739_v40 }
 0x394   :  { %2769 = vpow2.f32 %v1492_v8  ;;  %v1494_v42 = vmul.f32 1.442695, %v1463_v57  ;;  %v2752_v4 = vpop.eup %2751  ;;  %v1531_v41 = vmul.f32 %v2750_v10, %v3743_v52  ;;  %v2533_v57 = vld [vmem:[%s4094_s6 + $0x30] sm:$0xff]  }
 0x395   :  { %2771 = vpow2.f32 %v1488_v36  ;;  %v1490_v32 = vmul.f32 1.442695, %v1461_v44  ;;  %v2754_v14 = vpop.eup %2753  ;;  %v1529_v9 = vmul.f32 %v2752_v4, %v3747_v30  ;;  %2445 = vmatprep.subr.bf16.mxu0 %v2533_v57 }
 0x396   :  { %2773 = vpow2.f32 %v1494_v42  ;;  %v2756_v27 = vpop.eup %2755  ;;  %v1545_v17 = vpack.c.bf16 %v1531_v41, %v1530_v56  ;;  %v1506_v37 = vadd.f32 1.0, %v2754_v14  ;;  %2446 = vmatpush3.bf16.msra.mxu0 %v2533_v57 }
 0x397   :  { %2775 = vpow2.f32 %v1490_v32  ;;  %v2758_v16 = vpop.eup %2757  ;;  %v1544_v63 = vpack.c.bf16 %v1529_v9, %v1528_v51  ;;  %v1504_v48 = vadd.f32 1.0, %v2756_v27 }
 0x398   :  { %v2760_v58 = vpop.eup %2759  ;;  %2777 = vrcp.f32 %v1506_v37  ;;  %v1507_v49 = vadd.f32 1.0, %v2758_v16 }
 0x399   :  { %2779 = vrcp.f32 %v1504_v48  ;;  %v1505_v52 = vadd.f32 1.0, %v2760_v58  ;;  %2429 = vmatprep.mubr.msk.bf16.mxu1 %vm812_vm0, %v1544_v63 }
 0x39a   :  { %v2762_v59 = vpop.eup %2761  ;;  %2781 = vrcp.f32 %v1507_v49  ;;  %2430 = vmatmul.mubr.msk.bf16.vlgmr.msra.gmra.mrb[16].mxu1 %vm812_vm0, %v1545_v17 }
 0x39b   :  { %v2764_v21 = vpop.eup %2763  ;;  %2783 = vrcp.f32 %v1505_v52  ;;  %v1534_v39 = vmul.f32 %v2762_v59, %v3752_v15 }
 0x39c   :  { %v2766_v40 = vpop.eup %2765  ;;  %v1532_v29 = vmul.f32 %v2764_v21, %v3755_v60 }
 0x39d   :  { %v2768_v30 = vpop.eup %2767  ;;  %v1535_v62 = vmul.f32 %v2766_v40, %v3759_v12 }
 0x39e   :  { %v2770_v13 = vpop.eup %2769  ;;  %v1533_v1 = vmul.f32 %v2768_v30, %v3763_v43 }
 0x39f   :  { %v2772_v18 = vpop.eup %2771  ;;  %v1547_v46 = vpack.c.bf16 %v1535_v62, %v1534_v39  ;;  %v1510_v31 = vadd.f32 1.0, %v2770_v13 }
 0x3a0   :  { %v2774_v7 = vpop.eup %2773  ;;  %v1546_v53 = vpack.c.bf16 %v1533_v1, %v1532_v29  ;;  %v1508_v5 = vadd.f32 1.0, %v2772_v18 }
 0x3a1   :  { %v2776_v33 = vpop.eup %2775  ;;  %2785 = vrcp.f32 %v1510_v31  ;;  %v1511_v47 = vadd.f32 1.0, %v2774_v7 }
 0x3a2   :  { %2787 = vrcp.f32 %v1508_v5  ;;  %v1509_v3 = vadd.f32 1.0, %v2776_v33  ;;  %2433 = vmatprep.mubr.msk.bf16.mxu1 %vm812_vm0, %v1546_v53  ;;  %v2778_v15 = vpop.eup %2777 }
 0x3a3   :  { %2789 = vrcp.f32 %v1511_v47  ;;  %2434 = vmatmul.mubr.msk.bf16.gmra.mrb[20].mxu1 %vm812_vm0, %v1547_v46  ;;  %v2780_v60 = vpop.eup %2779  ;;  %v1538_v61 = vmul.f32 %v2778_v15, %v3768_v6 }
 0x3a4   :  { %2791 = vrcp.f32 %v1509_v3  ;;  %v2782_v12 = vpop.eup %2781  ;;  %v1536_v0 = vmul.f32 %v2780_v60, %v3771_v11 }
 0x3a5   :  { %v2784_v43 = vpop.eup %2783  ;;  %v1539_v22 = vmul.f32 %v2782_v12, %v3775_v50 }
 0x3a6   :  { %v1537_v54 = vmul.f32 %v2784_v43, %v3779_v38 }
 0x3a7   :  { %v1549_v26 = vpack.c.bf16 %v1539_v22, %v1538_v61 }
 0x3a8   :  { %v1548_v45 = vpack.c.bf16 %v1537_v54, %v1536_v0 }
 0x3aa   :  { %2437 = vmatprep.mubr.msk.bf16.mxu1 %vm812_vm0, %v1548_v45 }
 0x3ab   :  { %v2786_v2 = vpop.eup %2785  ;;  %2438 = vmatmul.mubr.msk.bf16.gmra.mrb[24].mxu1 %vm812_vm0, %v1549_v26 }
 0x3ac   :  { %v2788_v55 = vpop.eup %2787  ;;  %v1542_v34 = vmul.f32 %v2786_v2, %v3784_v35  ;;  %v2534_v35 = vld [vmem:[%s4094_s6 + $0x38] sm:$0xff]  }
 0x3ad   :  { %v2790_v28 = vpop.eup %2789  ;;  %v1540_v50 = vmul.f32 %v2788_v55, %v3787_v25  ;;  %2447 = vmatprep.subr.bf16.mxu0 %v2534_v35  ;;  %v3832_v25 = vld [vmem:[%s4095_s7 + $0x2] ss:$0 sm:$0xff] }
 0x3ae   :  { %v2792_v20 = vpop.eup %2791  ;;  %v1543_v6 = vmul.f32 %v2790_v28, %v3791_v24  ;;  %2448 = vmatpush3.bf16.msra.mxu0 %v2534_v35 }
 0x3af   :  { %v1541_v11 = vmul.f32 %v2792_v20, %v3795_v23 }
 0x3b0   :  { %v1551_v8 = vpack.c.bf16 %v1543_v6, %v1542_v34 }
 0x3b1   :  { %v1550_v38 = vpack.c.bf16 %v1541_v11, %v1540_v50 }
 0x3b3   :  { %2441 = vmatprep.mubr.msk.bf16.mxu1 %vm812_vm0, %v1550_v38 }
 0x3b4   :  { %2442 = vmatmul.mubr.msk.bf16.gmra.mrb[28].mxu1 %vm812_vm0, %v1551_v8 }
 0x46d   :  { %v2431_v24 = vpop.f32.mrb[16].mxu1 }
 0x46e   :  { %v3835_v23 = vadd.f32 %v2431_v24, %v3832_v25  ;;  %v1635_v19 = vpop.f32.mrb[17].mxu1 }
 0x46f   :  { %v3838_v36 = vadd.f32 %v3832_v25, %v1635_v19  ;;  %v2432_v44 = vpop.f32.mrb[18].mxu1 }
 0x470   :  { %v1700_v10 = vsub.f32 0.0, %v3835_v23  ;;  %v3842_v42 = vadd.f32 %v2432_v44, %v3832_v25  ;;  %v1638_v4 = vpop.f32.mrb[19].mxu1 }
 0x471   :  { %v1698_v56 = vsub.f32 0.0, %v3838_v36  ;;  %v3846_v41 = vadd.f32 %v3832_v25, %v1638_v4 }
 0x472   :  { %v1718_v32 = vmul.f32 1.442695, %v1700_v10  ;;  %v1701_v14 = vsub.f32 0.0, %v3842_v42 }
 0x473   :  { %v1714_v51 = vmul.f32 1.442695, %v1698_v56  ;;  %v1699_v9 = vsub.f32 0.0, %v3846_v41 }
 0x474   :  { %2793 = vpow2.f32 %v1718_v32  ;;  %v1720_v27 = vmul.f32 1.442695, %v1701_v14 }
 0x475   :  { %2795 = vpow2.f32 %v1714_v51  ;;  %v1716_v17 = vmul.f32 1.442695, %v1699_v9 }
 0x476   :  { %v2435_v37 = vpop.f32.mrb[20].mxu1  ;;  %2797 = vpow2.f32 %v1720_v27 }
 0x477   :  { %v3851_v16 = vadd.f32 %v2435_v37, %v3832_v25  ;;  %v1651_v63 = vpop.f32.mrb[21].mxu1  ;;  %2799 = vpow2.f32 %v1716_v17 }
 0x478   :  { %v3854_v48 = vadd.f32 %v3832_v25, %v1651_v63  ;;  %v2436_v58 = vpop.f32.mrb[22].mxu1 }
 0x479   :  { %v1704_v49 = vsub.f32 0.0, %v3851_v16  ;;  %v3858_v59 = vadd.f32 %v2436_v58, %v3832_v25  ;;  %v1654_v52 = vpop.f32.mrb[23].mxu1 }
 0x47a   :  { %v1702_v21 = vsub.f32 0.0, %v3854_v48  ;;  %v3862_v40 = vadd.f32 %v3832_v25, %v1654_v52 }
 0x47b   :  { %v1726_v30 = vmul.f32 1.442695, %v1704_v49  ;;  %v1705_v39 = vsub.f32 0.0, %v3858_v59 }
 0x47c   :  { %v1722_v62 = vmul.f32 1.442695, %v1702_v21  ;;  %v1703_v13 = vsub.f32 0.0, %v3862_v40 }
 0x47d   :  { %2801 = vpow2.f32 %v1726_v30  ;;  %v1728_v29 = vmul.f32 1.442695, %v1705_v39 }
 0x47e   :  { %2803 = vpow2.f32 %v1722_v62  ;;  %v1724_v1 = vmul.f32 1.442695, %v1703_v13  ;;  %v2794_v18 = vpop.eup %2793  ;;  %v2439_v46 = vpop.f32.mrb[24].mxu1 }
 0x47f   :  { %2805 = vpow2.f32 %v1728_v29  ;;  %v2796_v31 = vpop.eup %2795  ;;  %v1748_v7 = vadd.f32 1.0, %v2794_v18  ;;  %v3867_v53 = vadd.f32 %v2439_v46, %v3832_v25  ;;  %v1667_v5 = vpop.f32.mrb[25].mxu1 }
 0x480   :  { %2807 = vpow2.f32 %v1724_v1  ;;  %v2798_v33 = vpop.eup %2797  ;;  %v1746_v47 = vadd.f32 1.0, %v2796_v31  ;;  %v3870_v3 = vadd.f32 %v3832_v25, %v1667_v5  ;;  %v2440_v15 = vpop.f32.mrb[26].mxu1 }
 0x481   :  { %v2800_v60 = vpop.eup %2799  ;;  %2809 = vrcp.f32 %v1748_v7  ;;  %v1749_v12 = vadd.f32 1.0, %v2798_v33  ;;  %v1708_v43 = vsub.f32 0.0, %v3867_v53  ;;  %v3874_v61 = vadd.f32 %v2440_v15, %v3832_v25  ;;  %v1670_v22 = vpop.f32.mrb[27].mxu1 }
 0x482   :  { %2811 = vrcp.f32 %v1746_v47  ;;  %v1747_v0 = vadd.f32 1.0, %v2800_v60  ;;  %v1706_v54 = vsub.f32 0.0, %v3870_v3  ;;  %v3878_v26 = vadd.f32 %v3832_v25, %v1670_v22 }
 0x483   :  { %2813 = vrcp.f32 %v1749_v12  ;;  %v1734_v45 = vmul.f32 1.442695, %v1708_v43  ;;  %v1709_v2 = vsub.f32 0.0, %v3874_v61 }
 0x484   :  { %2815 = vrcp.f32 %v1747_v0  ;;  %v1730_v55 = vmul.f32 1.442695, %v1706_v54  ;;  %v1707_v28 = vsub.f32 0.0, %v3878_v26 }
 0x485   :  { %2817 = vpow2.f32 %v1734_v45  ;;  %v1736_v20 = vmul.f32 1.442695, %v1709_v2 }
 0x486   :  { %2819 = vpow2.f32 %v1730_v55  ;;  %v1732_v6 = vmul.f32 1.442695, %v1707_v28 }
 0x487   :  { %v2802_v34 = vpop.eup %2801  ;;  %v2443_v50 = vpop.f32.mrb[28].mxu1  ;;  %2821 = vpow2.f32 %v1736_v20 }
 0x488   :  { %v2804_v11 = vpop.eup %2803  ;;  %v1752_v8 = vadd.f32 1.0, %v2802_v34  ;;  %v3883_v38 = vadd.f32 %v2443_v50, %v3832_v25  ;;  %v1683_v57 = vpop.f32.mrb[29].mxu1  ;;  %2823 = vpow2.f32 %v1732_v6 }
 0x489   :  { %v2806_v35 = vpop.eup %2805  ;;  %v1750_v24 = vadd.f32 1.0, %v2804_v11  ;;  %v3886_v19 = vadd.f32 %v3832_v25, %v1683_v57  ;;  %v2444_v44 = vpop.f32.mrb[30].mxu1 }
 0x48a   :  { %v2808_v10 = vpop.eup %2807  ;;  %2825 = vrcp.f32 %v1752_v8  ;;  %v1753_v4 = vadd.f32 1.0, %v2806_v35  ;;  %v1712_v56 = vsub.f32 0.0, %v3883_v38  ;;  %v3890_v32 = vadd.f32 %v2444_v44, %v3832_v25  ;;  %v1686_v14 = vpop.f32.mrb[31].mxu1 }
 0x48b   :  { %2827 = vrcp.f32 %v1750_v24  ;;  %v1751_v51 = vadd.f32 1.0, %v2808_v10  ;;  %v1710_v9 = vsub.f32 0.0, %v3886_v19  ;;  %v3894_v27 = vadd.f32 %v3832_v25, %v1686_v14  ;;  %v2810_v17 = vpop.eup %2809 }
 0x48c   :  { %2829 = vrcp.f32 %v1753_v4  ;;  %v1742_v37 = vmul.f32 1.442695, %v1712_v56  ;;  %v1713_v63 = vsub.f32 0.0, %v3890_v32  ;;  %v2812_v58 = vpop.eup %2811  ;;  %v1780_v62 = vmul.f32 %v2810_v17, %v3835_v23 }
 0x48d   :  { %2831 = vrcp.f32 %v1751_v51  ;;  %v1738_v49 = vmul.f32 1.442695, %v1710_v9  ;;  %v1711_v52 = vsub.f32 0.0, %v3894_v27  ;;  %v2814_v21 = vpop.eup %2813  ;;  %v1778_v1 = vmul.f32 %v2812_v58, %v3838_v36 }
 0x48e   :  { %2833 = vpow2.f32 %v1742_v37  ;;  %v1744_v30 = vmul.f32 1.442695, %v1713_v63  ;;  %v2816_v39 = vpop.eup %2815  ;;  %v1781_v13 = vmul.f32 %v2814_v21, %v3842_v42  ;;  %v2535_v63 = vld [vmem:[%s4096_s8] sm:$0xff]  }
 0x48f   :  { %2835 = vpow2.f32 %v1738_v49  ;;  %v1740_v25 = vmul.f32 1.442695, %v1711_v52  ;;  %v2818_v29 = vpop.eup %2817  ;;  %v1779_v18 = vmul.f32 %v2816_v39, %v3846_v41  ;;  %2465 = vmatprep.subr.bf16.mxu1 %v2535_v63 }
 0x490   :  { %2837 = vpow2.f32 %v1744_v30  ;;  %v2820_v46 = vpop.eup %2819  ;;  %v1795_v31 = vpack.c.bf16 %v1781_v13, %v1780_v62  ;;  %v1756_v7 = vadd.f32 1.0, %v2818_v29  ;;  %2466 = vmatpush3.bf16.msra.mxu1 %v2535_v63 }
 0x491   :  { %2839 = vpow2.f32 %v1740_v25  ;;  %v2822_v5 = vpop.eup %2821  ;;  %v1794_v33 = vpack.c.bf16 %v1779_v18, %v1778_v1  ;;  %v1754_v47 = vadd.f32 1.0, %v2820_v46 }
 0x492   :  { %v2824_v15 = vpop.eup %2823  ;;  %2841 = vrcp.f32 %v1756_v7  ;;  %v1757_v23 = vadd.f32 1.0, %v2822_v5 }
 0x493   :  { %2843 = vrcp.f32 %v1754_v47  ;;  %v1755_v42 = vadd.f32 1.0, %v2824_v15  ;;  %2449 = vmatprep.mubr.msk.bf16.mxu0 %vm812_vm0, %v1794_v33 }
 0x494   :  { %v2826_v60 = vpop.eup %2825  ;;  %2845 = vrcp.f32 %v1757_v23  ;;  %2450 = vmatmul.mubr.msk.bf16.vlgmr.msra.gmra.mrb[32].mxu0 %vm812_vm0, %v1795_v31 }
 0x495   :  { %v2828_v12 = vpop.eup %2827  ;;  %2847 = vrcp.f32 %v1755_v42  ;;  %v1784_v43 = vmul.f32 %v2826_v60, %v3851_v16 }
 0x496   :  { %v2830_v36 = vpop.eup %2829  ;;  %v1782_v54 = vmul.f32 %v2828_v12, %v3854_v48 }
 0x497   :  { %v2832_v41 = vpop.eup %2831  ;;  %v1785_v22 = vmul.f32 %v2830_v36, %v3858_v59 }
 0x498   :  { %v2834_v0 = vpop.eup %2833  ;;  %v1783_v45 = vmul.f32 %v2832_v41, %v3862_v40 }
 0x499   :  { %v2836_v2 = vpop.eup %2835  ;;  %v1797_v55 = vpack.c.bf16 %v1785_v22, %v1784_v43  ;;  %v1760_v28 = vadd.f32 1.0, %v2834_v0 }
 0x49a   :  { %v2838_v20 = vpop.eup %2837  ;;  %v1796_v34 = vpack.c.bf16 %v1783_v45, %v1782_v54  ;;  %v1758_v6 = vadd.f32 1.0, %v2836_v2 }
 0x49b   :  { %v2840_v50 = vpop.eup %2839  ;;  %2849 = vrcp.f32 %v1760_v28  ;;  %v1761_v11 = vadd.f32 1.0, %v2838_v20 }
 0x49c   :  { %2851 = vrcp.f32 %v1758_v6  ;;  %v1759_v8 = vadd.f32 1.0, %v2840_v50  ;;  %2453 = vmatprep.mubr.msk.bf16.mxu0 %vm812_vm0, %v1796_v34  ;;  %v2842_v16 = vpop.eup %2841 }
 0x49d   :  { %2853 = vrcp.f32 %v1761_v11  ;;  %2454 = vmatmul.mubr.msk.bf16.gmra.mrb[36].mxu0 %vm812_vm0, %v1797_v55  ;;  %v2844_v48 = vpop.eup %2843  ;;  %v1788_v57 = vmul.f32 %v2842_v16, %v3867_v53 }
 0x49e   :  { %2855 = vrcp.f32 %v1759_v8  ;;  %v2846_v59 = vpop.eup %2845  ;;  %v1786_v24 = vmul.f32 %v2844_v48, %v3870_v3 }
 0x49f   :  { %v2848_v40 = vpop.eup %2847  ;;  %v1789_v35 = vmul.f32 %v2846_v59, %v3874_v61 }
 0x4a0   :  { %v1787_v44 = vmul.f32 %v2848_v40, %v3878_v26 }
 0x4a1   :  { %v1799_v10 = vpack.c.bf16 %v1789_v35, %v1788_v57 }
 0x4a2   :  { %v1798_v4 = vpack.c.bf16 %v1787_v44, %v1786_v24 }
 0x4a4   :  { %2457 = vmatprep.mubr.msk.bf16.mxu0 %vm812_vm0, %v1798_v4 }
 0x4a5   :  { %v2850_v56 = vpop.eup %2849  ;;  %2458 = vmatmul.mubr.msk.bf16.gmra.mrb[40].mxu0 %vm812_vm0, %v1799_v10 }
 0x4a6   :  { %v2852_v14 = vpop.eup %2851  ;;  %v1792_v17 = vmul.f32 %v2850_v56, %v3883_v38  ;;  %v2536_v38 = vld [vmem:[%s4096_s8 + $0x8] sm:$0xff]  }
 0x4a7   :  { %v2854_v51 = vpop.eup %2853  ;;  %v1790_v61 = vmul.f32 %v2852_v14, %v3886_v19  ;;  %2467 = vmatprep.subr.bf16.mxu1 %v2536_v38  ;;  %v15_v19 = vstv %s4097_s9 }
 0x4a8   :  { %v2856_v9 = vpop.eup %2855  ;;  %v1793_v53 = vmul.f32 %v2854_v51, %v3890_v32  ;;  %2468 = vmatpush3.bf16.msra.mxu1 %v2536_v38  ;;  %16 = vst [vmem:[#allocation2] sm:$0x1] %v15_v19  ;;  %v3934_v32 = vld [vmem:[%s4095_s7 + $0x3] ss:$0 sm:$0xff] }
 0x4a9   :  { %v1791_v3 = vmul.f32 %v2856_v9, %v3894_v27 }
 0x4aa   :  { %v1801_v37 = vpack.c.bf16 %v1793_v53, %v1792_v17 }
 0x4ab   :  { %v1800_v26 = vpack.c.bf16 %v1791_v3, %v1790_v61 }
 0x4ad   :  { %2461 = vmatprep.mubr.msk.bf16.mxu0 %vm812_vm0, %v1800_v26 }
 0x4ae   :  { %2462 = vmatmul.mubr.msk.bf16.gmra.mrb[44].mxu0 %vm812_vm0, %v1801_v37 }
 0x567   :  { %v2451_v27 = vpop.f32.mrb[32].mxu0 }
 0x568   :  { %v3937_v58 = vadd.f32 %v2451_v27, %v3934_v32  ;;  %v1885_v49 = vpop.f32.mrb[33].mxu0 }
 0x569   :  { %v3940_v52 = vadd.f32 %v3934_v32, %v1885_v49  ;;  %v2452_v21 = vpop.f32.mrb[34].mxu0 }
 0x56a   :  { %v1950_v30 = vsub.f32 0.0, %v3937_v58  ;;  %v3944_v39 = vadd.f32 %v2452_v21, %v3934_v32  ;;  %v1888_v62 = vpop.f32.mrb[35].mxu0 }
 0x56b   :  { %v1948_v13 = vsub.f32 0.0, %v3940_v52  ;;  %v3948_v25 = vadd.f32 %v3934_v32, %v1888_v62 }
 0x56c   :  { %v1968_v29 = vmul.f32 1.442695, %v1950_v30  ;;  %v1951_v1 = vsub.f32 0.0, %v3944_v39 }
 0x56d   :  { %v1964_v18 = vmul.f32 1.442695, %v1948_v13  ;;  %v1949_v46 = vsub.f32 0.0, %v3948_v25 }
 0x56e   :  { %2857 = vpow2.f32 %v1968_v29  ;;  %v1970_v31 = vmul.f32 1.442695, %v1951_v1 }
 0x56f   :  { %2859 = vpow2.f32 %v1964_v18  ;;  %v1966_v7 = vmul.f32 1.442695, %v1949_v46 }
 0x570   :  { %v2455_v5 = vpop.f32.mrb[36].mxu0  ;;  %2861 = vpow2.f32 %v1970_v31 }
 0x571   :  { %v3953_v33 = vadd.f32 %v2455_v5, %v3934_v32  ;;  %v1901_v47 = vpop.f32.mrb[37].mxu0  ;;  %2863 = vpow2.f32 %v1966_v7 }
 0x572   :  { %v3956_v15 = vadd.f32 %v3934_v32, %v1901_v47  ;;  %v2456_v23 = vpop.f32.mrb[38].mxu0 }
 0x573   :  { %v1954_v60 = vsub.f32 0.0, %v3953_v33  ;;  %v3960_v42 = vadd.f32 %v2456_v23, %v3934_v32  ;;  %v1904_v12 = vpop.f32.mrb[39].mxu0 }
 0x574   :  { %v1952_v36 = vsub.f32 0.0, %v3956_v15  ;;  %v3964_v41 = vadd.f32 %v3934_v32, %v1904_v12 }
 0x575   :  { %v1976_v43 = vmul.f32 1.442695, %v1954_v60  ;;  %v1955_v22 = vsub.f32 0.0, %v3960_v42 }
 0x576   :  { %v1972_v0 = vmul.f32 1.442695, %v1952_v36  ;;  %v1953_v54 = vsub.f32 0.0, %v3964_v41 }
 0x577   :  { %2865 = vpow2.f32 %v1976_v43  ;;  %v1978_v45 = vmul.f32 1.442695, %v1955_v22 }
 0x578   :  { %2867 = vpow2.f32 %v1972_v0  ;;  %v1974_v2 = vmul.f32 1.442695, %v1953_v54  ;;  %v2858_v55 = vpop.eup %2857  ;;  %v2459_v28 = vpop.f32.mrb[40].mxu0 }
 0x579   :  { %2869 = vpow2.f32 %v1978_v45  ;;  %v2860_v20 = vpop.eup %2859  ;;  %v1998_v34 = vadd.f32 1.0, %v2858_v55  ;;  %v3969_v6 = vadd.f32 %v2459_v28, %v3934_v32  ;;  %v1917_v50 = vpop.f32.mrb[41].mxu0 }
 0x57a   :  { %2871 = vpow2.f32 %v1974_v2  ;;  %v2862_v11 = vpop.eup %2861  ;;  %v1996_v8 = vadd.f32 1.0, %v2860_v20  ;;  %v3972_v16 = vadd.f32 %v3934_v32, %v1917_v50  ;;  %v2460_v48 = vpop.f32.mrb[42].mxu0 }
 0x57b   :  { %v2864_v59 = vpop.eup %2863  ;;  %2873 = vrcp.f32 %v1998_v34  ;;  %v1999_v40 = vadd.f32 1.0, %v2862_v11  ;;  %v1958_v57 = vsub.f32 0.0, %v3969_v6  ;;  %v3976_v35 = vadd.f32 %v2460_v48, %v3934_v32  ;;  %v1920_v24 = vpop.f32.mrb[43].mxu0 }
 0x57c   :  { %2875 = vrcp.f32 %v1996_v8  ;;  %v1997_v44 = vadd.f32 1.0, %v2864_v59  ;;  %v1956_v10 = vsub.f32 0.0, %v3972_v16  ;;  %v3980_v4 = vadd.f32 %v3934_v32, %v1920_v24 }
 0x57d   :  { %2877 = vrcp.f32 %v1999_v40  ;;  %v1984_v56 = vmul.f32 1.442695, %v1958_v57  ;;  %v1959_v14 = vsub.f32 0.0, %v3976_v35 }
 0x57e   :  { %2879 = vrcp.f32 %v1997_v44  ;;  %v1980_v51 = vmul.f32 1.442695, %v1956_v10  ;;  %v1957_v9 = vsub.f32 0.0, %v3980_v4 }
 0x57f   :  { %2881 = vpow2.f32 %v1984_v56  ;;  %v1986_v17 = vmul.f32 1.442695, %v1959_v14 }
 0x580   :  { %2883 = vpow2.f32 %v1980_v51  ;;  %v1982_v61 = vmul.f32 1.442695, %v1957_v9 }
 0x581   :  { %v2866_v53 = vpop.eup %2865  ;;  %v2463_v3 = vpop.f32.mrb[44].mxu0  ;;  %2885 = vpow2.f32 %v1986_v17 }
 0x582   :  { %v2868_v37 = vpop.eup %2867  ;;  %v2002_v26 = vadd.f32 1.0, %v2866_v53  ;;  %v3985_v63 = vadd.f32 %v2463_v3, %v3934_v32  ;;  %v1933_v38 = vpop.f32.mrb[45].mxu0  ;;  %2887 = vpow2.f32 %v1982_v61 }
 0x583   :  { %v2870_v19 = vpop.eup %2869  ;;  %v2000_v27 = vadd.f32 1.0, %v2868_v37  ;;  %v3988_v49 = vadd.f32 %v3934_v32, %v1933_v38  ;;  %v2464_v21 = vpop.f32.mrb[46].mxu0 }
 0x584   :  { %v2872_v30 = vpop.eup %2871  ;;  %2889 = vrcp.f32 %v2002_v26  ;;  %v2003_v62 = vadd.f32 1.0, %v2870_v19  ;;  %v1962_v13 = vsub.f32 0.0, %v3985_v63  ;;  %v3992_v29 = vadd.f32 %v2464_v21, %v3934_v32  ;;  %v1936_v1 = vpop.f32.mrb[47].mxu0 }
 0x585   :  { %2891 = vrcp.f32 %v2000_v27  ;;  %v2001_v18 = vadd.f32 1.0, %v2872_v30  ;;  %v1960_v46 = vsub.f32 0.0, %v3988_v49  ;;  %v3996_v31 = vadd.f32 %v3934_v32, %v1936_v1  ;;  %v2874_v7 = vpop.eup %2873 }
 0x586   :  { %2893 = vrcp.f32 %v2003_v62  ;;  %v1992_v5 = vmul.f32 1.442695, %v1962_v13  ;;  %v1963_v47 = vsub.f32 0.0, %v3992_v29  ;;  %v2876_v23 = vpop.eup %2875  ;;  %v2030_v0 = vmul.f32 %v2874_v7, %v3937_v58 }
 0x587   :  { %2895 = vrcp.f32 %v2001_v18  ;;  %v1988_v60 = vmul.f32 1.442695, %v1960_v46  ;;  %v1961_v12 = vsub.f32 0.0, %v3996_v31  ;;  %v2878_v36 = vpop.eup %2877  ;;  %v2028_v2 = vmul.f32 %v2876_v23, %v3940_v52 }
 0x588   :  { %2897 = vpow2.f32 %v1992_v5  ;;  %v1994_v43 = vmul.f32 1.442695, %v1963_v47  ;;  %v2880_v22 = vpop.eup %2879  ;;  %v2031_v54 = vmul.f32 %v2878_v36, %v3944_v39  ;;  %v2294_v47 = vld [vmem:[#allocation2] ss:$0 sm:$0xff] }
 0x589   :  { %2899 = vpow2.f32 %v1988_v60  ;;  %v1990_v32 = vmul.f32 1.442695, %v1961_v12  ;;  %v2882_v45 = vpop.eup %2881  ;;  %v2029_v55 = vmul.f32 %v2880_v22, %v3948_v25 }
 0x58a   :  { %2901 = vpow2.f32 %v1994_v43  ;;  %v2884_v28 = vpop.eup %2883  ;;  %v2045_v20 = vpack.c.bf16 %v2031_v54, %v2030_v0  ;;  %v2006_v34 = vadd.f32 1.0, %v2882_v45 }
 0x58b   :  { %2903 = vpow2.f32 %v1990_v32  ;;  %v2886_v50 = vpop.eup %2885  ;;  %v2044_v11 = vpack.c.bf16 %v2029_v55, %v2028_v2  ;;  %v2004_v8 = vadd.f32 1.0, %v2884_v28 }
 0x58c   :  { %v2888_v48 = vpop.eup %2887  ;;  %2905 = vrcp.f32 %v2006_v34  ;;  %v2007_v58 = vadd.f32 1.0, %v2886_v50 }
 0x58d   :  { %2907 = vrcp.f32 %v2004_v8  ;;  %v2005_v39 = vadd.f32 1.0, %v2888_v48  ;;  %2469 = vmatprep.mubr.msk.bf16.mxu1 %vm812_vm0, %v2044_v11 }
 0x58e   :  { %v2890_v59 = vpop.eup %2889  ;;  %2909 = vrcp.f32 %v2007_v58  ;;  %2470 = vmatmul.mubr.msk.bf16.vlgmr.msra.gmra.mrb[32].mxu1 %vm812_vm0, %v2045_v20 }
 0x58f   :  { %v2892_v40 = vpop.eup %2891  ;;  %2911 = vrcp.f32 %v2005_v39  ;;  %v2034_v57 = vmul.f32 %v2890_v59, %v3953_v33 }
 0x590   :  { %v2894_v52 = vpop.eup %2893  ;;  %v2032_v10 = vmul.f32 %v2892_v40, %v3956_v15 }
 0x591   :  { %v2896_v25 = vpop.eup %2895  ;;  %v2035_v24 = vmul.f32 %v2894_v52, %v3960_v42 }
 0x592   :  { %v2898_v44 = vpop.eup %2897  ;;  %v2033_v56 = vmul.f32 %v2896_v25, %v3964_v41 }
 0x593   :  { %v2900_v14 = vpop.eup %2899  ;;  %v2047_v51 = vpack.c.bf16 %v2035_v24, %v2034_v57  ;;  %v2010_v9 = vadd.f32 1.0, %v2898_v44 }
 0x594   :  { %v2902_v17 = vpop.eup %2901  ;;  %v2046_v53 = vpack.c.bf16 %v2033_v56, %v2032_v10  ;;  %v2008_v61 = vadd.f32 1.0, %v2900_v14 }
 0x595   :  { %v2904_v3 = vpop.eup %2903  ;;  %2913 = vrcp.f32 %v2010_v9  ;;  %v2011_v37 = vadd.f32 1.0, %v2902_v17 }
 0x596   :  { %2915 = vrcp.f32 %v2008_v61  ;;  %v2009_v26 = vadd.f32 1.0, %v2904_v3  ;;  %2473 = vmatprep.mubr.msk.bf16.mxu1 %vm812_vm0, %v2046_v53  ;;  %v2906_v33 = vpop.eup %2905 }
 0x597   :  { %2917 = vrcp.f32 %v2011_v37  ;;  %2474 = vmatmul.mubr.msk.bf16.gmra.mrb[36].mxu1 %vm812_vm0, %v2047_v51  ;;  %v2908_v15 = vpop.eup %2907  ;;  %v2038_v38 = vmul.f32 %v2906_v33, %v3969_v6 }
 0x598   :  { %2919 = vrcp.f32 %v2009_v26  ;;  %v2910_v42 = vpop.eup %2909  ;;  %v2036_v27 = vmul.f32 %v2908_v15, %v3972_v16 }
 0x599   :  { %v2912_v41 = vpop.eup %2911  ;;  %v2039_v19 = vmul.f32 %v2910_v42, %v3976_v35 }
 0x59a   :  { %v2037_v21 = vmul.f32 %v2912_v41, %v3980_v4 }
 0x59b   :  { %v2049_v30 = vpack.c.bf16 %v2039_v19, %v2038_v38 }
 0x59c   :  { %v2048_v62 = vpack.c.bf16 %v2037_v21, %v2036_v27 }
 0x59e   :  { %2477 = vmatprep.mubr.msk.bf16.mxu1 %vm812_vm0, %v2048_v62 }
 0x59f   :  { %v2914_v13 = vpop.eup %2913  ;;  %2478 = vmatmul.mubr.msk.bf16.gmra.mrb[40].mxu1 %vm812_vm0, %v2049_v30 }
 0x5a0   :  { %v2916_v1 = vpop.eup %2915  ;;  %v2042_v7 = vmul.f32 %v2914_v13, %v3985_v63 }
 0x5a1   :  { %v2918_v18 = vpop.eup %2917  ;;  %v2040_v35 = vmul.f32 %v2916_v1, %v3988_v49 }
 0x5a2   :  { %v2920_v46 = vpop.eup %2919  ;;  %v2043_v6 = vmul.f32 %v2918_v18, %v3992_v29 }
 0x5a3   :  { %v2041_v16 = vmul.f32 %v2920_v46, %v3996_v31 }
 0x5a4   :  { %v2051_v5 = vpack.c.bf16 %v2043_v6, %v2042_v7 }
 0x5a5   :  { %v2050_v4 = vpack.c.bf16 %v2041_v16, %v2040_v35 }
 0x5a7   :  { %2481 = vmatprep.mubr.msk.bf16.mxu1 %vm812_vm0, %v2050_v4 }
 0x5a8   :  { %2482 = vmatmul.mubr.msk.bf16.gmra.mrb[44].mxu1 %vm812_vm0, %v2051_v5 }
 0x661   :  { %v2471_v23 = vpop.f32.mrb[32].mxu1 }
 0x662   :  { %v2142_v60 = vadd.f32 %v2471_v23, %v2294_v47  ;;  %v2133_v12 = vpop.f32.mrb[33].mxu1 }
 0x663   :  { %v2134_v36 = vadd.f32 %v2294_v47, %v2133_v12  ;;  %v2472_v43 = vpop.f32.mrb[34].mxu1 }
 0x664   :  { %2199 = vst.msk [vmem:[%s4098_s10 + $0x10] sm:$0xff] %vm2196_vm1, %v2142_v60  ;;  %v2145_v63 = vadd.f32 %v2472_v43, %v2294_v47  ;;  %v2136_v49 = vpop.f32.mrb[35].mxu1 }
 0x665   :  { %2197 = vst.msk [vmem:[%s4098_s10] sm:$0xff] %vm2196_vm1, %v2134_v36  ;;  %v2137_v29 = vadd.f32 %v2294_v47, %v2136_v49 }
 0x666   :  { %2200 = vst.msk [vmem:[%s4098_s10 + $0x18] sm:$0xff] %vm2196_vm1, %v2145_v63 }
 0x667   :  { %2198 = vst.msk [vmem:[%s4098_s10 + $0x8] sm:$0xff] %vm2196_vm1, %v2137_v29 }
 0x66a   :  { %v2475_v31 = vpop.f32.mrb[36].mxu1 }
 0x66b   :  { %v2158_v22 = vadd.f32 %v2475_v31, %v2294_v47  ;;  %v2149_v0 = vpop.f32.mrb[37].mxu1 }
 0x66c   :  { %v2150_v54 = vadd.f32 %v2294_v47, %v2149_v0  ;;  %v2476_v32 = vpop.f32.mrb[38].mxu1 }
 0x66d   :  { %2203 = vst.msk [vmem:[%s4098_s10 + $0x30] sm:$0xff] %vm2196_vm1, %v2158_v22  ;;  %v2161_v45 = vadd.f32 %v2476_v32, %v2294_v47  ;;  %v2152_v2 = vpop.f32.mrb[39].mxu1 }
 0x66e   :  { %2201 = vst.msk [vmem:[%s4098_s10 + $0x20] sm:$0xff] %vm2196_vm1, %v2150_v54  ;;  %v2153_v55 = vadd.f32 %v2294_v47, %v2152_v2 }
 0x66f   :  { %2204 = vst.msk [vmem:[%s4098_s10 + $0x38] sm:$0xff] %vm2196_vm1, %v2161_v45 }
 0x670   :  { %2202 = vst.msk [vmem:[%s4098_s10 + $0x28] sm:$0xff] %vm2196_vm1, %v2153_v55 }
 0x672   :  { %v2479_v28 = vpop.f32.mrb[40].mxu1 }
 0x673   :  { %v2174_v20 = vadd.f32 %v2479_v28, %v2294_v47  ;;  %v2165_v34 = vpop.f32.mrb[41].mxu1 }
 0x674   :  { %v2166_v50 = vadd.f32 %v2294_v47, %v2165_v34  ;;  %v2480_v11 = vpop.f32.mrb[42].mxu1 }
 0x675   :  { %2207 = vst.msk [vmem:[%s4098_s10 + $0x50] sm:$0xff] %vm2196_vm1, %v2174_v20  ;;  %v2177_v8 = vadd.f32 %v2480_v11, %v2294_v47  ;;  %v2168_v48 = vpop.f32.mrb[43].mxu1 }
 0x676   :  { %2205 = vst.msk [vmem:[%s4098_s10 + $0x40] sm:$0xff] %vm2196_vm1, %v2166_v50  ;;  %v2169_v58 = vadd.f32 %v2294_v47, %v2168_v48 }
 0x677   :  { %2208 = vst.msk [vmem:[%s4098_s10 + $0x58] sm:$0xff] %vm2196_vm1, %v2177_v8 }
 0x678   :  { %2206 = vst.msk [vmem:[%s4098_s10 + $0x48] sm:$0xff] %vm2196_vm1, %v2169_v58 }
 0x67b   :  { %v2483_v59 = vpop.f32.mrb[44].mxu1 }
 0x67c   :  { %v2190_v39 = vadd.f32 %v2483_v59, %v2294_v47  ;;  %v2181_v40 = vpop.f32.mrb[45].mxu1 }
 0x67d   :  { %v2182_v52 = vadd.f32 %v2294_v47, %v2181_v40  ;;  %v2484_v25 = vpop.f32.mrb[46].mxu1 }
 0x67e   :  { %2211 = vst.msk [vmem:[%s4098_s10 + $0x70] sm:$0xff] %vm2196_vm1, %v2190_v39  ;;  %v2193_v57 = vadd.f32 %v2484_v25, %v2294_v47  ;;  %v2184_v24 = vpop.f32.mrb[47].mxu1 }
 0x67f   :  { %2209 = vst.msk [vmem:[%s4098_s10 + $0x60] sm:$0xff] %vm2196_vm1, %v2182_v52  ;;  %v2185_v44 = vadd.f32 %v2294_v47, %v2184_v24 }
 0x680   :  { %2212 = vst.msk [vmem:[%s4098_s10 + $0x78] sm:$0xff] %vm2196_vm1, %v2193_v57 }
 0x681   :  { %2210 = vst.msk [vmem:[%s4098_s10 + $0x68] sm:$0xff] %vm2196_vm1, %v2185_v44 }

</bundles_post_ra>
